<compile_context>
chip_gen: v7x
topology: tpu7x:2x2x1
jax: 0.10.0
libtpu: 0.0.40
codegen_flags: <defaults>
</compile_context>

<pallas_src>
import jax
import jax.numpy as jnp
from jax.experimental import pallas as pl
from jax.experimental.pallas import tpu as pltpu

B = 4              # batch
INPUT_DIM = 32     # module input_dim
L0, L1 = 16, 8     # sequence length before / after MaxPool1d(2)
C0, C1 = 16, 32    # channel counts of the two residual stages
FC_HID = 64
SLAB_W = 256       # lane width of the packed parameter slab (= B * FC_HID)
EPS = 1e-5

assert B * FC_HID == SLAB_W


# ----------------------------- in-kernel math ------------------------------

def _gelu(x):
    # TODO(synk): PyTorch nn.GELU() is the exact erf form; tanh approximation
    # is used here (guaranteed Mosaic lowering; numerical diff ~1e-3).
    c = jnp.sqrt(2.0 / jnp.pi).astype(x.dtype)
    return 0.5 * x * (1.0 + jnp.tanh(c * (x + 0.044715 * x * x * x)))


def _sigmoid(x):
    return 1.0 / (1.0 + jnp.exp(-x))


def make_kernel(off):
    """Build the kernel; `off` maps name -> (row_offset, n_rows, n_cols)."""

    def kernel(x_ref, w_ref, o_ref):
        def load(name):
            r, nr, nc = off[name]
            return w_ref[r:r + nr, 0:nc]

        def conv3(x, sm, sp, wpre, bname):
            # x: (L, B*Cin); taps are block-diagonal (B*Cin, B*Cout) with the
            # BN scale already folded in.  Center tap uses x directly.
            xm = jnp.dot(sm, x, preferred_element_type=jnp.float32)   # x[t-1]
            xp = jnp.dot(sp, x, preferred_element_type=jnp.float32)   # x[t+1]
            out = (jnp.dot(xm, load(wpre + "0"), preferred_element_type=jnp.float32)
                   + jnp.dot(x, load(wpre + "1"), preferred_element_type=jnp.float32)
                   + jnp.dot(xp, load(wpre + "2"), preferred_element_type=jnp.float32))
            return out + load(bname)

        def res_block(x, pre, sm, sp, downsample):
            if downsample:
                idn = jnp.dot(x, load(pre + "ds_w"),
                              preferred_element_type=jnp.float32) + load(pre + "ds_b")
            else:
                idn = x
            out = jnp.maximum(conv3(x, sm, sp, pre + "c1_w", pre + "b1"), 0.0)
            out = conv3(out, sm, sp, pre + "c2_w", pre + "b2")
            # channel attention: per-sample mean over length (rows), two 1x1
            # convs (block-diagonal over batch), sigmoid gate.
            pooled = jnp.mean(out, axis=0, keepdims=True)              # (1, B*C)
            a = jnp.dot(pooled, load(pre + "ca1_w"),
                        preferred_element_type=jnp.float32) + load(pre + "ca1_b")
            a = jnp.maximum(a, 0.0)
            a = jnp.dot(a, load(pre + "ca2_w"),
                        preferred_element_type=jnp.float32) + load(pre + "ca2_b")
            out = out * _sigmoid(a)
            return jnp.maximum(out + idn, 0.0)

        # constant shift matrices, loaded once
        sm16, sp16 = load("sm16"), load("sp16")
        sm8, sp8 = load("sm8"), load("sp8")

        # preprocess: Linear + BN (folded) + GELU, computed directly as
        # (16, B) = W' @ x^T + b'  -> this IS the (L, B*Cin=1) conv input.
        h = jnp.dot(load("pre_w"), x_ref[...],
                    preferred_element_type=jnp.float32) + load("pre_b")
        h = _gelu(h)                                                   # (16, B)

        # Conv1d(1, 16, 3, padding=1) with bias
        y = conv3(h, sm16, sp16, "c0_w", "c0_b")                       # (16, 64)
        # ResidualBlock(16, 16)
        y = res_block(y, "rb1_", sm16, sp16, downsample=False)         # (16, 64)
        # MaxPool1d(2) over the length (row) axis
        y = jnp.maximum(
            jnp.dot(load("pool_even"), y, preferred_element_type=jnp.float32),
            jnp.dot(load("pool_odd"), y, preferred_element_type=jnp.float32))  # (8, 64)
        # ResidualBlock(16, 32) with 1x1 conv + BN downsample
        y = res_block(y, "rb2_", sm8, sp8, downsample=True)            # (8, 128)
        # AdaptiveAvgPool1d(8) on length 8 is the identity.

        # classifier: Linear(256, 64) + GELU + Dropout(eval: id) + Linear(64, 1)
        r0, _, _ = off["fc1_w"]
        acc = load("fc1_b")                                            # (1, 256)
        for l in range(L1):
            wl = w_ref[r0 + l * B * C1: r0 + (l + 1) * B * C1, 0:B * FC_HID]
            acc = acc + jnp.dot(y[l:l + 1, :], wl,
                                preferred_element_type=jnp.float32)
        acc = _gelu(acc)                                               # (1, 256)
        res = jnp.dot(acc, load("fc2_w"),
                      preferred_element_type=jnp.float32) + load("fc2_b")  # (1, 128)

        # full-tile, unmasked (8, 128) store; wrapper slices [0, :B]
        o_ref[...] = jnp.broadcast_to(res, (8, 128))

    return kernel


# --------------------------- host-side preparation --------------------------

def pack_slab(entries):
    """Pack a list of (name, 2D array) into one (rows, SLAB_W) f32 slab."""
    offsets, chunks, r = {}, [], 0
    for name, a in entries:
        a = jnp.asarray(a, jnp.float32)
        nr, nc = a.shape
        offsets[name] = (r, nr, nc)
        a = jnp.pad(a, ((0, 0), (0, SLAB_W - nc)))
        pad_r = (-nr) % 8                      # keep every entry 8-row aligned
        if pad_r:
            a = jnp.pad(a, ((0, pad_r), (0, 0)))
        chunks.append(a)
        r += nr + pad_r
    return jnp.concatenate(chunks, axis=0), offsets


def _bn_fold(bn):
    s = bn["g"] / jnp.sqrt(bn["v"] + EPS)
    return s, bn["b"] - bn["m"] * s


def _bd(w):
    # (Cin, Cout) -> block-diagonal (B*Cin, B*Cout), one block per sample.
    return jnp.kron(jnp.eye(B, dtype=jnp.float32), w)


def _tile_row(v):
    # (C,) -> (1, B*C) with lane index b*C + c == v[c]
    return jnp.tile(v[None, :], (1, B))


def _conv_taps(w, scale=None):
    # torch conv weight (Cout, Cin, 3) -> 3 block-diag taps (B*Cin, B*Cout),
    # with an optional folded BatchNorm scale per output channel.
    taps = []
    for k in range(3):
        wk = jnp.transpose(w[:, :, k])                 # (Cin, Cout)
        if scale is not None:
            wk = wk * scale[None, :]
        taps.append(_bd(wk))
    return taps


def prepare_slab(tp):
    entries = []

    # constant shift / pooling matrices (hoisted out of the kernel entirely)
    entries += [("sm16", jnp.eye(L0, k=-1)), ("sp16", jnp.eye(L0, k=1)),
                ("sm8", jnp.eye(L1, k=-1)), ("sp8", jnp.eye(L1, k=1))]
    rr = jnp.arange(L1)[:, None]
    cc = jnp.arange(L0)[None, :]
    entries += [("pool_even", (cc == 2 * rr).astype(jnp.float32)),
                ("pool_odd", (cc == 2 * rr + 1).astype(jnp.float32))]

    # preprocess Linear + BatchNorm1d folded
    s, t = _bn_fold(tp["pre_bn"])
    entries.append(("pre_w", tp["pre_w"] * s[:, None]))
    entries.append(("pre_b", (tp["pre_b"] * s + t)[:, None]))

    # first Conv1d (has bias, no BN)
    for k, wk in enumerate(_conv_taps(tp["c0_w"])):
        entries.append((f"c0_w{k}", wk))
    entries.append(("c0_b", _tile_row(tp["c0_b"])))

    # residual blocks (BN folded into the conv taps)
    for pre, blk in (("rb1_", tp["rb1"]), ("rb2_", tp["rb2"])):
        s1, t1 = _bn_fold(blk["bn1"])
        s2, t2 = _bn_fold(blk["bn2"])
        for k, wk in enumerate(_conv_taps(blk["c1_w"], s1)):
            entries.append((pre + f"c1_w{k}", wk))
        entries.append((pre + "b1", _tile_row(t1)))
        for k, wk in enumerate(_conv_taps(blk["c2_w"], s2)):
            entries.append((pre + f"c2_w{k}", wk))
        entries.append((pre + "b2", _tile_row(t2)))
        entries.append((pre + "ca1_w", _bd(jnp.transpose(blk["ca1_w"][:, :, 0]))))
        entries.append((pre + "ca1_b", _tile_row(blk["ca1_b"])))
        entries.append((pre + "ca2_w", _bd(jnp.transpose(blk["ca2_w"][:, :, 0]))))
        entries.append((pre + "ca2_b", _tile_row(blk["ca2_b"])))
        if "ds_w" in blk:
            sd, td = _bn_fold(blk["ds_bn"])
            entries.append((pre + "ds_w",
                            _bd(jnp.transpose(blk["ds_w"][:, :, 0]) * sd[None, :])))
            entries.append((pre + "ds_b", _tile_row(td)))

    # classifier: torch fc1 weight (64, 256) uses flat index c*L1 + l.
    wf = jnp.transpose(tp["fc1_w"].reshape(FC_HID, C1, L1), (2, 1, 0))  # (L1, C1, 64)
    fc1_bd = jnp.concatenate([_bd(wf[l]) for l in range(L1)], axis=0)   # (L1*B*C1, B*64)
    entries.append(("fc1_w", fc1_bd))
    entries.append(("fc1_b", _tile_row(tp["fc1_b"])))
    fc2_bd = jnp.pad(_bd(jnp.transpose(tp["fc2_w"])), ((0, 0), (0, 128 - B)))
    entries.append(("fc2_w", fc2_bd))                                   # (256, 128)
    entries.append(("fc2_b",
                    jnp.pad(jnp.tile(tp["fc2_b"][None, :], (1, B)),
                            ((0, 0), (0, 128 - B)))))                   # (1, 128)

    return pack_slab(entries)


def init_torch_params(key):
    keys = iter(jax.random.split(key, 64))

    def nrm(shape, scale=0.1):
        return scale * jax.random.normal(next(keys), shape, dtype=jnp.float32)

    def bn(c):
        return {"g": 1.0 + nrm((c,)), "b": nrm((c,)),
                "m": nrm((c,)), "v": 1.0 + jnp.abs(nrm((c,)))}

    return {
        "pre_w": nrm((C0, INPUT_DIM)), "pre_b": nrm((C0,)), "pre_bn": bn(C0),
        "c0_w": nrm((C0, 1, 3)), "c0_b": nrm((C0,)),
        "rb1": {
            "c1_w": nrm((C0, C0, 3)), "bn1": bn(C0),
            "c2_w": nrm((C0, C0, 3)), "bn2": bn(C0),
            "ca1_w": nrm((C0 // 8, C0, 1)), "ca1_b": nrm((C0 // 8,)),
            "ca2_w": nrm((C0, C0 // 8, 1)), "ca2_b": nrm((C0,)),
        },
        "rb2": {
            "c1_w": nrm((C1, C0, 3)), "bn1": bn(C1),
            "c2_w": nrm((C1, C1, 3)), "bn2": bn(C1),
            "ca1_w": nrm((C1 // 8, C1, 1)), "ca1_b": nrm((C1 // 8,)),
            "ca2_w": nrm((C1, C1 // 8, 1)), "ca2_b": nrm((C1,)),
            "ds_w": nrm((C1, C0, 1)), "ds_bn": bn(C1),
        },
        "fc1_w": nrm((FC_HID, C1 * L1)), "fc1_b": nrm((FC_HID,)),
        "fc2_w": nrm((1, FC_HID)), "fc2_b": nrm((1,)),
    }


# --------------------------------- wrapper ----------------------------------

def dynamic_cnn_forward(x, slab, off):
    # x: (B, input_dim) float32 -> (B,), like DynamicCNN.forward(...).squeeze(1)
    xT = jnp.transpose(x)                  # glue: host-side layout change
    out = pl.pallas_call(
        make_kernel(off),
        out_shape=jax.ShapeDtypeStruct((8, 128), jnp.float32),
        in_specs=[pl.BlockSpec(memory_space=pltpu.MemorySpace.VMEM),
                  pl.BlockSpec(memory_space=pltpu.MemorySpace.VMEM)],
        out_specs=pl.BlockSpec(memory_space=pltpu.MemorySpace.VMEM),
    )(xT, slab)
    return out[0, :x.shape[0]]


if __name__ == "__main__":
    key = jax.random.PRNGKey(0)
    kx, kp = jax.random.split(key)
    x = jax.random.normal(kx, (B, INPUT_DIM), dtype=jnp.float32)
    tp = init_torch_params(kp)
    slab, off = prepare_slab(tp)
    out = dynamic_cnn_forward(x, slab, off)
    jax.block_until_ready(out)
    assert out.shape == (B,) and out.dtype == jnp.float32
    assert bool(jnp.all(jnp.isfinite(out)))
    print("KERNEL_OK")
</pallas_src>

<mosaic_0001>
module attributes {stable_mosaic.version = 11 : i64} {
  func.func @kernel(%arg0: memref<32x4xf32, #tpu.memory_space<vmem>>, %arg1: memref<2736x256xf32, #tpu.memory_space<vmem>>, %arg2: memref<8x128xf32, #tpu.memory_space<vmem>>) attributes {dimension_semantics = [], scalar_prefetch = 0 : i64, scratch_operands = 0 : i64, tpu.core_type = #tpu.core_type<tc>} {
    %c0 = arith.constant 0 : index
    %c0_0 = arith.constant 0 : index
    %0 = vector.load %arg1[%c0, %c0_0] : memref<2736x256xf32, #tpu.memory_space<vmem>>, vector<16x16xf32>
    %c16 = arith.constant 16 : index
    %c0_1 = arith.constant 0 : index
    %1 = vector.load %arg1[%c16, %c0_1] : memref<2736x256xf32, #tpu.memory_space<vmem>>, vector<16x16xf32>
    %c32 = arith.constant 32 : index
    %c0_2 = arith.constant 0 : index
    %2 = vector.load %arg1[%c32, %c0_2] : memref<2736x256xf32, #tpu.memory_space<vmem>>, vector<8x8xf32>
    %c40 = arith.constant 40 : index
    %c0_3 = arith.constant 0 : index
    %3 = vector.load %arg1[%c40, %c0_3] : memref<2736x256xf32, #tpu.memory_space<vmem>>, vector<8x8xf32>
    %c64 = arith.constant 64 : index
    %c0_4 = arith.constant 0 : index
    %4 = vector.load %arg1[%c64, %c0_4] : memref<2736x256xf32, #tpu.memory_space<vmem>>, vector<16x32xf32>
    %c0_5 = arith.constant 0 : index
    %c0_6 = arith.constant 0 : index
    %5 = vector.load %arg0[%c0_5, %c0_6] : memref<32x4xf32, #tpu.memory_space<vmem>>, vector<32x4xf32>
    %cst = arith.constant dense<0.000000e+00> : vector<16x4xf32>
    %6 = tpu.matmul %4, %5, %cst {dimension_numbers = #tpu.dot_dimension_numbers<[1], [0], [0], [1], [0, 0, 1, 1], [], []>} : vector<16x32xf32>, vector<32x4xf32>, vector<16x4xf32> -> vector<16x4xf32>
    %c80 = arith.constant 80 : index
    %c0_7 = arith.constant 0 : index
    %7 = vector.load %arg1[%c80, %c0_7] : memref<2736x256xf32, #tpu.memory_space<vmem>>, vector<16x1xf32>
    %8 = vector.broadcast %7 : vector<16x1xf32> to vector<16x4xf32>
    %9 = arith.addf %6, %8 : vector<16x4xf32>
    %cst_8 = arith.constant 0.636619746 : f32
    %10 = math.sqrt %cst_8 : f32
    %cst_9 = arith.constant 5.000000e-01 : f32
    %11 = vector.broadcast %cst_9 : f32 to vector<16x4xf32>
    %12 = arith.mulf %11, %9 : vector<16x4xf32>
    %cst_10 = arith.constant 4.471500e-02 : f32
    %13 = vector.broadcast %cst_10 : f32 to vector<16x4xf32>
    %14 = arith.mulf %13, %9 : vector<16x4xf32>
    %15 = arith.mulf %14, %9 : vector<16x4xf32>
    %16 = arith.mulf %15, %9 : vector<16x4xf32>
    %17 = arith.addf %9, %16 : vector<16x4xf32>
    %18 = vector.broadcast %10 : f32 to vector<16x4xf32>
    %19 = arith.mulf %18, %17 : vector<16x4xf32>
    %20 = math.tanh %19 : vector<16x4xf32>
    %cst_11 = arith.constant 1.000000e+00 : f32
    %21 = vector.broadcast %cst_11 : f32 to vector<16x4xf32>
    %22 = arith.addf %21, %20 : vector<16x4xf32>
    %23 = arith.mulf %12, %22 : vector<16x4xf32>
    %cst_12 = arith.constant dense<0.000000e+00> : vector<16x4xf32>
    %24 = tpu.matmul %0, %23, %cst_12 {dimension_numbers = #tpu.dot_dimension_numbers<[1], [0], [0], [1], [0, 0, 1, 1], [], []>} : vector<16x16xf32>, vector<16x4xf32>, vector<16x4xf32> -> vector<16x4xf32>
    %cst_13 = arith.constant dense<0.000000e+00> : vector<16x4xf32>
    %25 = tpu.matmul %1, %23, %cst_13 {dimension_numbers = #tpu.dot_dimension_numbers<[1], [0], [0], [1], [0, 0, 1, 1], [], []>} : vector<16x16xf32>, vector<16x4xf32>, vector<16x4xf32> -> vector<16x4xf32>
    %c96 = arith.constant 96 : index
    %c0_14 = arith.constant 0 : index
    %26 = vector.load %arg1[%c96, %c0_14] : memref<2736x256xf32, #tpu.memory_space<vmem>>, vector<4x64xf32>
    %cst_15 = arith.constant dense<0.000000e+00> : vector<16x64xf32>
    %27 = tpu.matmul %24, %26, %cst_15 {dimension_numbers = #tpu.dot_dimension_numbers<[1], [0], [0], [1], [0, 0, 1, 1], [], []>} : vector<16x4xf32>, vector<4x64xf32>, vector<16x64xf32> -> vector<16x64xf32>
    %c104 = arith.constant 104 : index
    %c0_16 = arith.constant 0 : index
    %28 = vector.load %arg1[%c104, %c0_16] : memref<2736x256xf32, #tpu.memory_space<vmem>>, vector<4x64xf32>
    %cst_17 = arith.constant dense<0.000000e+00> : vector<16x64xf32>
    %29 = tpu.matmul %23, %28, %cst_17 {dimension_numbers = #tpu.dot_dimension_numbers<[1], [0], [0], [1], [0, 0, 1, 1], [], []>} : vector<16x4xf32>, vector<4x64xf32>, vector<16x64xf32> -> vector<16x64xf32>
    %30 = arith.addf %27, %29 : vector<16x64xf32>
    %c112 = arith.constant 112 : index
    %c0_18 = arith.constant 0 : index
    %31 = vector.load %arg1[%c112, %c0_18] : memref<2736x256xf32, #tpu.memory_space<vmem>>, vector<4x64xf32>
    %cst_19 = arith.constant dense<0.000000e+00> : vector<16x64xf32>
    %32 = tpu.matmul %25, %31, %cst_19 {dimension_numbers = #tpu.dot_dimension_numbers<[1], [0], [0], [1], [0, 0, 1, 1], [], []>} : vector<16x4xf32>, vector<4x64xf32>, vector<16x64xf32> -> vector<16x64xf32>
    %33 = arith.addf %30, %32 : vector<16x64xf32>
    %c120 = arith.constant 120 : index
    %c0_20 = arith.constant 0 : index
    %34 = vector.load %arg1[%c120, %c0_20] : memref<2736x256xf32, #tpu.memory_space<vmem>>, vector<1x64xf32>
    %35 = vector.broadcast %34 : vector<1x64xf32> to vector<16x64xf32>
    %36 = arith.addf %33, %35 : vector<16x64xf32>
    %cst_21 = arith.constant dense<0.000000e+00> : vector<16x64xf32>
    %37 = tpu.matmul %0, %36, %cst_21 {dimension_numbers = #tpu.dot_dimension_numbers<[1], [0], [0], [1], [0, 0, 1, 1], [], []>} : vector<16x16xf32>, vector<16x64xf32>, vector<16x64xf32> -> vector<16x64xf32>
    %cst_22 = arith.constant dense<0.000000e+00> : vector<16x64xf32>
    %38 = tpu.matmul %1, %36, %cst_22 {dimension_numbers = #tpu.dot_dimension_numbers<[1], [0], [0], [1], [0, 0, 1, 1], [], []>} : vector<16x16xf32>, vector<16x64xf32>, vector<16x64xf32> -> vector<16x64xf32>
    %c128 = arith.constant 128 : index
    %c0_23 = arith.constant 0 : index
    %39 = vector.load %arg1[%c128, %c0_23] : memref<2736x256xf32, #tpu.memory_space<vmem>>, vector<64x64xf32>
    %cst_24 = arith.constant dense<0.000000e+00> : vector<16x64xf32>
    %40 = tpu.matmul %37, %39, %cst_24 {dimension_numbers = #tpu.dot_dimension_numbers<[1], [0], [0], [1], [0, 0, 1, 1], [], []>} : vector<16x64xf32>, vector<64x64xf32>, vector<16x64xf32> -> vector<16x64xf32>
    %c192 = arith.constant 192 : index
    %c0_25 = arith.constant 0 : index
    %41 = vector.load %arg1[%c192, %c0_25] : memref<2736x256xf32, #tpu.memory_space<vmem>>, vector<64x64xf32>
    %cst_26 = arith.constant dense<0.000000e+00> : vector<16x64xf32>
    %42 = tpu.matmul %36, %41, %cst_26 {dimension_numbers = #tpu.dot_dimension_numbers<[1], [0], [0], [1], [0, 0, 1, 1], [], []>} : vector<16x64xf32>, vector<64x64xf32>, vector<16x64xf32> -> vector<16x64xf32>
    %43 = arith.addf %40, %42 : vector<16x64xf32>
    %c256 = arith.constant 256 : index
    %c0_27 = arith.constant 0 : index
    %44 = vector.load %arg1[%c256, %c0_27] : memref<2736x256xf32, #tpu.memory_space<vmem>>, vector<64x64xf32>
    %cst_28 = arith.constant dense<0.000000e+00> : vector<16x64xf32>
    %45 = tpu.matmul %38, %44, %cst_28 {dimension_numbers = #tpu.dot_dimension_numbers<[1], [0], [0], [1], [0, 0, 1, 1], [], []>} : vector<16x64xf32>, vector<64x64xf32>, vector<16x64xf32> -> vector<16x64xf32>
    %46 = arith.addf %43, %45 : vector<16x64xf32>
    %c320 = arith.constant 320 : index
    %c0_29 = arith.constant 0 : index
    %47 = vector.load %arg1[%c320, %c0_29] : memref<2736x256xf32, #tpu.memory_space<vmem>>, vector<1x64xf32>
    %48 = vector.broadcast %47 : vector<1x64xf32> to vector<16x64xf32>
    %49 = arith.addf %46, %48 : vector<16x64xf32>
    %cst_30 = arith.constant 0.000000e+00 : f32
    %50 = vector.broadcast %cst_30 : f32 to vector<16x64xf32>
    %51 = arith.maximumf %49, %50 : vector<16x64xf32>
    %cst_31 = arith.constant dense<0.000000e+00> : vector<16x64xf32>
    %52 = tpu.matmul %0, %51, %cst_31 {dimension_numbers = #tpu.dot_dimension_numbers<[1], [0], [0], [1], [0, 0, 1, 1], [], []>} : vector<16x16xf32>, vector<16x64xf32>, vector<16x64xf32> -> vector<16x64xf32>
    %cst_32 = arith.constant dense<0.000000e+00> : vector<16x64xf32>
    %53 = tpu.matmul %1, %51, %cst_32 {dimension_numbers = #tpu.dot_dimension_numbers<[1], [0], [0], [1], [0, 0, 1, 1], [], []>} : vector<16x16xf32>, vector<16x64xf32>, vector<16x64xf32> -> vector<16x64xf32>
    %c328 = arith.constant 328 : index
    %c0_33 = arith.constant 0 : index
    %54 = vector.load %arg1[%c328, %c0_33] : memref<2736x256xf32, #tpu.memory_space<vmem>>, vector<64x64xf32>
    %cst_34 = arith.constant dense<0.000000e+00> : vector<16x64xf32>
    %55 = tpu.matmul %52, %54, %cst_34 {dimension_numbers = #tpu.dot_dimension_numbers<[1], [0], [0], [1], [0, 0, 1, 1], [], []>} : vector<16x64xf32>, vector<64x64xf32>, vector<16x64xf32> -> vector<16x64xf32>
    %c392 = arith.constant 392 : index
    %c0_35 = arith.constant 0 : index
    %56 = vector.load %arg1[%c392, %c0_35] : memref<2736x256xf32, #tpu.memory_space<vmem>>, vector<64x64xf32>
    %cst_36 = arith.constant dense<0.000000e+00> : vector<16x64xf32>
    %57 = tpu.matmul %51, %56, %cst_36 {dimension_numbers = #tpu.dot_dimension_numbers<[1], [0], [0], [1], [0, 0, 1, 1], [], []>} : vector<16x64xf32>, vector<64x64xf32>, vector<16x64xf32> -> vector<16x64xf32>
    %58 = arith.addf %55, %57 : vector<16x64xf32>
    %c456 = arith.constant 456 : index
    %c0_37 = arith.constant 0 : index
    %59 = vector.load %arg1[%c456, %c0_37] : memref<2736x256xf32, #tpu.memory_space<vmem>>, vector<64x64xf32>
    %cst_38 = arith.constant dense<0.000000e+00> : vector<16x64xf32>
    %60 = tpu.matmul %53, %59, %cst_38 {dimension_numbers = #tpu.dot_dimension_numbers<[1], [0], [0], [1], [0, 0, 1, 1], [], []>} : vector<16x64xf32>, vector<64x64xf32>, vector<16x64xf32> -> vector<16x64xf32>
    %61 = arith.addf %58, %60 : vector<16x64xf32>
    %c520 = arith.constant 520 : index
    %c0_39 = arith.constant 0 : index
    %62 = vector.load %arg1[%c520, %c0_39] : memref<2736x256xf32, #tpu.memory_space<vmem>>, vector<1x64xf32>
    %63 = vector.broadcast %62 : vector<1x64xf32> to vector<16x64xf32>
    %64 = arith.addf %61, %63 : vector<16x64xf32>
    %cst_40 = arith.constant dense<0.000000e+00> : vector<64xf32>
    %65 = vector.multi_reduction <add>, %64, %cst_40 [0] : vector<16x64xf32> to vector<64xf32>
    %66 = vector.shape_cast %65 : vector<64xf32> to vector<1x64xf32>
    %cst_41 = arith.constant 1.600000e+01 : f32
    %67 = vector.broadcast %cst_41 : f32 to vector<1x64xf32>
    %68 = arith.divf %66, %67 : vector<1x64xf32>
    %c528 = arith.constant 528 : index
    %c0_42 = arith.constant 0 : index
    %69 = vector.load %arg1[%c528, %c0_42] : memref<2736x256xf32, #tpu.memory_space<vmem>>, vector<64x8xf32>
    %cst_43 = arith.constant dense<0.000000e+00> : vector<1x8xf32>
    %70 = tpu.matmul %68, %69, %cst_43 {dimension_numbers = #tpu.dot_dimension_numbers<[1], [0], [0], [1], [0, 0, 1, 1], [], []>} : vector<1x64xf32>, vector<64x8xf32>, vector<1x8xf32> -> vector<1x8xf32>
    %c592 = arith.constant 592 : index
    %c0_44 = arith.constant 0 : index
    %71 = vector.load %arg1[%c592, %c0_44] : memref<2736x256xf32, #tpu.memory_space<vmem>>, vector<1x8xf32>
    %72 = arith.addf %70, %71 : vector<1x8xf32>
    %cst_45 = arith.constant 0.000000e+00 : f32
    %73 = vector.broadcast %cst_45 : f32 to vector<1x8xf32>
    %74 = arith.maximumf %72, %73 : vector<1x8xf32>
    %c600 = arith.constant 600 : index
    %c0_46 = arith.constant 0 : index
    %75 = vector.load %arg1[%c600, %c0_46] : memref<2736x256xf32, #tpu.memory_space<vmem>>, vector<8x64xf32>
    %cst_47 = arith.constant dense<0.000000e+00> : vector<1x64xf32>
    %76 = tpu.matmul %74, %75, %cst_47 {dimension_numbers = #tpu.dot_dimension_numbers<[1], [0], [0], [1], [0, 0, 1, 1], [], []>} : vector<1x8xf32>, vector<8x64xf32>, vector<1x64xf32> -> vector<1x64xf32>
    %c608 = arith.constant 608 : index
    %c0_48 = arith.constant 0 : index
    %77 = vector.load %arg1[%c608, %c0_48] : memref<2736x256xf32, #tpu.memory_space<vmem>>, vector<1x64xf32>
    %78 = arith.addf %76, %77 : vector<1x64xf32>
    %cst_49 = arith.constant 0.000000e+00 : f32
    %79 = vector.broadcast %cst_49 : f32 to vector<1x64xf32>
    %80 = arith.subf %79, %78 : vector<1x64xf32>
    %81 = math.exp %80 : vector<1x64xf32>
    %cst_50 = arith.constant 1.000000e+00 : f32
    %82 = vector.broadcast %cst_50 : f32 to vector<1x64xf32>
    %83 = arith.addf %82, %81 : vector<1x64xf32>
    %cst_51 = arith.constant 1.000000e+00 : f32
    %84 = vector.broadcast %cst_51 : f32 to vector<1x64xf32>
    %85 = arith.divf %84, %83 : vector<1x64xf32>
    %86 = vector.broadcast %85 : vector<1x64xf32> to vector<16x64xf32>
    %87 = arith.mulf %64, %86 : vector<16x64xf32>
    %88 = arith.addf %87, %36 : vector<16x64xf32>
    %cst_52 = arith.constant 0.000000e+00 : f32
    %89 = vector.broadcast %cst_52 : f32 to vector<16x64xf32>
    %90 = arith.maximumf %88, %89 : vector<16x64xf32>
    %c48 = arith.constant 48 : index
    %c0_53 = arith.constant 0 : index
    %91 = vector.load %arg1[%c48, %c0_53] : memref<2736x256xf32, #tpu.memory_space<vmem>>, vector<8x16xf32>
    %cst_54 = arith.constant dense<0.000000e+00> : vector<8x64xf32>
    %92 = tpu.matmul %91, %90, %cst_54 {dimension_numbers = #tpu.dot_dimension_numbers<[1], [0], [0], [1], [0, 0, 1, 1], [], []>} : vector<8x16xf32>, vector<16x64xf32>, vector<8x64xf32> -> vector<8x64xf32>
    %c56 = arith.constant 56 : index
    %c0_55 = arith.constant 0 : index
    %93 = vector.load %arg1[%c56, %c0_55] : memref<2736x256xf32, #tpu.memory_space<vmem>>, vector<8x16xf32>
    %cst_56 = arith.constant dense<0.000000e+00> : vector<8x64xf32>
    %94 = tpu.matmul %93, %90, %cst_56 {dimension_numbers = #tpu.dot_dimension_numbers<[1], [0], [0], [1], [0, 0, 1, 1], [], []>} : vector<8x16xf32>, vector<16x64xf32>, vector<8x64xf32> -> vector<8x64xf32>
    %95 = arith.maximumf %92, %94 : vector<8x64xf32>
    %c1368 = arith.constant 1368 : index
    %c0_57 = arith.constant 0 : index
    %96 = vector.load %arg1[%c1368, %c0_57] : memref<2736x256xf32, #tpu.memory_space<vmem>>, vector<64x128xf32>
    %cst_58 = arith.constant dense<0.000000e+00> : vector<8x128xf32>
    %97 = tpu.matmul %95, %96, %cst_58 {dimension_numbers = #tpu.dot_dimension_numbers<[1], [0], [0], [1], [0, 0, 1, 1], [], []>} : vector<8x64xf32>, vector<64x128xf32>, vector<8x128xf32> -> vector<8x128xf32>
    %c1432 = arith.constant 1432 : index
    %c0_59 = arith.constant 0 : index
    %98 = vector.load %arg1[%c1432, %c0_59] : memref<2736x256xf32, #tpu.memory_space<vmem>>, vector<1x128xf32>
    %99 = vector.broadcast %98 : vector<1x128xf32> to vector<8x128xf32>
    %100 = arith.addf %97, %99 : vector<8x128xf32>
    %cst_60 = arith.constant dense<0.000000e+00> : vector<8x64xf32>
    %101 = tpu.matmul %2, %95, %cst_60 {dimension_numbers = #tpu.dot_dimension_numbers<[1], [0], [0], [1], [0, 0, 1, 1], [], []>} : vector<8x8xf32>, vector<8x64xf32>, vector<8x64xf32> -> vector<8x64xf32>
    %cst_61 = arith.constant dense<0.000000e+00> : vector<8x64xf32>
    %102 = tpu.matmul %3, %95, %cst_61 {dimension_numbers = #tpu.dot_dimension_numbers<[1], [0], [0], [1], [0, 0, 1, 1], [], []>} : vector<8x8xf32>, vector<8x64xf32>, vector<8x64xf32> -> vector<8x64xf32>
    %c616 = arith.constant 616 : index
    %c0_62 = arith.constant 0 : index
    %103 = vector.load %arg1[%c616, %c0_62] : memref<2736x256xf32, #tpu.memory_space<vmem>>, vector<64x128xf32>
    %cst_63 = arith.constant dense<0.000000e+00> : vector<8x128xf32>
    %104 = tpu.matmul %101, %103, %cst_63 {dimension_numbers = #tpu.dot_dimension_numbers<[1], [0], [0], [1], [0, 0, 1, 1], [], []>} : vector<8x64xf32>, vector<64x128xf32>, vector<8x128xf32> -> vector<8x128xf32>
    %c680 = arith.constant 680 : index
    %c0_64 = arith.constant 0 : index
    %105 = vector.load %arg1[%c680, %c0_64] : memref<2736x256xf32, #tpu.memory_space<vmem>>, vector<64x128xf32>
    %cst_65 = arith.constant dense<0.000000e+00> : vector<8x128xf32>
    %106 = tpu.matmul %95, %105, %cst_65 {dimension_numbers = #tpu.dot_dimension_numbers<[1], [0], [0], [1], [0, 0, 1, 1], [], []>} : vector<8x64xf32>, vector<64x128xf32>, vector<8x128xf32> -> vector<8x128xf32>
    %107 = arith.addf %104, %106 : vector<8x128xf32>
    %c744 = arith.constant 744 : index
    %c0_66 = arith.constant 0 : index
    %108 = vector.load %arg1[%c744, %c0_66] : memref<2736x256xf32, #tpu.memory_space<vmem>>, vector<64x128xf32>
    %cst_67 = arith.constant dense<0.000000e+00> : vector<8x128xf32>
    %109 = tpu.matmul %102, %108, %cst_67 {dimension_numbers = #tpu.dot_dimension_numbers<[1], [0], [0], [1], [0, 0, 1, 1], [], []>} : vector<8x64xf32>, vector<64x128xf32>, vector<8x128xf32> -> vector<8x128xf32>
    %110 = arith.addf %107, %109 : vector<8x128xf32>
    %c808 = arith.constant 808 : index
    %c0_68 = arith.constant 0 : index
    %111 = vector.load %arg1[%c808, %c0_68] : memref<2736x256xf32, #tpu.memory_space<vmem>>, vector<1x128xf32>
    %112 = vector.broadcast %111 : vector<1x128xf32> to vector<8x128xf32>
    %113 = arith.addf %110, %112 : vector<8x128xf32>
    %cst_69 = arith.constant 0.000000e+00 : f32
    %114 = vector.broadcast %cst_69 : f32 to vector<8x128xf32>
    %115 = arith.maximumf %113, %114 : vector<8x128xf32>
    %cst_70 = arith.constant dense<0.000000e+00> : vector<8x128xf32>
    %116 = tpu.matmul %2, %115, %cst_70 {dimension_numbers = #tpu.dot_dimension_numbers<[1], [0], [0], [1], [0, 0, 1, 1], [], []>} : vector<8x8xf32>, vector<8x128xf32>, vector<8x128xf32> -> vector<8x128xf32>
    %cst_71 = arith.constant dense<0.000000e+00> : vector<8x128xf32>
    %117 = tpu.matmul %3, %115, %cst_71 {dimension_numbers = #tpu.dot_dimension_numbers<[1], [0], [0], [1], [0, 0, 1, 1], [], []>} : vector<8x8xf32>, vector<8x128xf32>, vector<8x128xf32> -> vector<8x128xf32>
    %c816 = arith.constant 816 : index
    %c0_72 = arith.constant 0 : index
    %118 = vector.load %arg1[%c816, %c0_72] : memref<2736x256xf32, #tpu.memory_space<vmem>>, vector<128x128xf32>
    %cst_73 = arith.constant dense<0.000000e+00> : vector<8x128xf32>
    %119 = tpu.matmul %116, %118, %cst_73 {dimension_numbers = #tpu.dot_dimension_numbers<[1], [0], [0], [1], [0, 0, 1, 1], [], []>} : vector<8x128xf32>, vector<128x128xf32>, vector<8x128xf32> -> vector<8x128xf32>
    %c944 = arith.constant 944 : index
    %c0_74 = arith.constant 0 : index
    %120 = vector.load %arg1[%c944, %c0_74] : memref<2736x256xf32, #tpu.memory_space<vmem>>, vector<128x128xf32>
    %cst_75 = arith.constant dense<0.000000e+00> : vector<8x128xf32>
    %121 = tpu.matmul %115, %120, %cst_75 {dimension_numbers = #tpu.dot_dimension_numbers<[1], [0], [0], [1], [0, 0, 1, 1], [], []>} : vector<8x128xf32>, vector<128x128xf32>, vector<8x128xf32> -> vector<8x128xf32>
    %122 = arith.addf %119, %121 : vector<8x128xf32>
    %c1072 = arith.constant 1072 : index
    %c0_76 = arith.constant 0 : index
    %123 = vector.load %arg1[%c1072, %c0_76] : memref<2736x256xf32, #tpu.memory_space<vmem>>, vector<128x128xf32>
    %cst_77 = arith.constant dense<0.000000e+00> : vector<8x128xf32>
    %124 = tpu.matmul %117, %123, %cst_77 {dimension_numbers = #tpu.dot_dimension_numbers<[1], [0], [0], [1], [0, 0, 1, 1], [], []>} : vector<8x128xf32>, vector<128x128xf32>, vector<8x128xf32> -> vector<8x128xf32>
    %125 = arith.addf %122, %124 : vector<8x128xf32>
    %c1200 = arith.constant 1200 : index
    %c0_78 = arith.constant 0 : index
    %126 = vector.load %arg1[%c1200, %c0_78] : memref<2736x256xf32, #tpu.memory_space<vmem>>, vector<1x128xf32>
    %127 = vector.broadcast %126 : vector<1x128xf32> to vector<8x128xf32>
    %128 = arith.addf %125, %127 : vector<8x128xf32>
    %cst_79 = arith.constant dense<0.000000e+00> : vector<128xf32>
    %129 = vector.multi_reduction <add>, %128, %cst_79 [0] : vector<8x128xf32> to vector<128xf32>
    %130 = vector.shape_cast %129 : vector<128xf32> to vector<1x128xf32>
    %cst_80 = arith.constant 8.000000e+00 : f32
    %131 = vector.broadcast %cst_80 : f32 to vector<1x128xf32>
    %132 = arith.divf %130, %131 : vector<1x128xf32>
    %c1208 = arith.constant 1208 : index
    %c0_81 = arith.constant 0 : index
    %133 = vector.load %arg1[%c1208, %c0_81] : memref<2736x256xf32, #tpu.memory_space<vmem>>, vector<128x16xf32>
    %cst_82 = arith.constant dense<0.000000e+00> : vector<1x16xf32>
    %134 = tpu.matmul %132, %133, %cst_82 {dimension_numbers = #tpu.dot_dimension_numbers<[1], [0], [0], [1], [0, 0, 1, 1], [], []>} : vector<1x128xf32>, vector<128x16xf32>, vector<1x16xf32> -> vector<1x16xf32>
    %c1336 = arith.constant 1336 : index
    %c0_83 = arith.constant 0 : index
    %135 = vector.load %arg1[%c1336, %c0_83] : memref<2736x256xf32, #tpu.memory_space<vmem>>, vector<1x16xf32>
    %136 = arith.addf %134, %135 : vector<1x16xf32>
    %cst_84 = arith.constant 0.000000e+00 : f32
    %137 = vector.broadcast %cst_84 : f32 to vector<1x16xf32>
    %138 = arith.maximumf %136, %137 : vector<1x16xf32>
    %c1344 = arith.constant 1344 : index
    %c0_85 = arith.constant 0 : index
    %139 = vector.load %arg1[%c1344, %c0_85] : memref<2736x256xf32, #tpu.memory_space<vmem>>, vector<16x128xf32>
    %cst_86 = arith.constant dense<0.000000e+00> : vector<1x128xf32>
    %140 = tpu.matmul %138, %139, %cst_86 {dimension_numbers = #tpu.dot_dimension_numbers<[1], [0], [0], [1], [0, 0, 1, 1], [], []>} : vector<1x16xf32>, vector<16x128xf32>, vector<1x128xf32> -> vector<1x128xf32>
    %c1360 = arith.constant 1360 : index
    %c0_87 = arith.constant 0 : index
    %141 = vector.load %arg1[%c1360, %c0_87] : memref<2736x256xf32, #tpu.memory_space<vmem>>, vector<1x128xf32>
    %142 = arith.addf %140, %141 : vector<1x128xf32>
    %cst_88 = arith.constant 0.000000e+00 : f32
    %143 = vector.broadcast %cst_88 : f32 to vector<1x128xf32>
    %144 = arith.subf %143, %142 : vector<1x128xf32>
    %145 = math.exp %144 : vector<1x128xf32>
    %cst_89 = arith.constant 1.000000e+00 : f32
    %146 = vector.broadcast %cst_89 : f32 to vector<1x128xf32>
    %147 = arith.addf %146, %145 : vector<1x128xf32>
    %cst_90 = arith.constant 1.000000e+00 : f32
    %148 = vector.broadcast %cst_90 : f32 to vector<1x128xf32>
    %149 = arith.divf %148, %147 : vector<1x128xf32>
    %150 = vector.broadcast %149 : vector<1x128xf32> to vector<8x128xf32>
    %151 = arith.mulf %128, %150 : vector<8x128xf32>
    %152 = arith.addf %151, %100 : vector<8x128xf32>
    %cst_91 = arith.constant 0.000000e+00 : f32
    %153 = vector.broadcast %cst_91 : f32 to vector<8x128xf32>
    %154 = arith.maximumf %152, %153 : vector<8x128xf32>
    %c2464 = arith.constant 2464 : index
    %c0_92 = arith.constant 0 : index
    %155 = vector.load %arg1[%c2464, %c0_92] : memref<2736x256xf32, #tpu.memory_space<vmem>>, vector<1x256xf32>
    %c1440 = arith.constant 1440 : index
    %c0_93 = arith.constant 0 : index
    %156 = vector.load %arg1[%c1440, %c0_93] : memref<2736x256xf32, #tpu.memory_space<vmem>>, vector<128x256xf32>
    %157 = vector.extract_strided_slice %154 {offsets = [0, 0], sizes = [1, 128], strides = [1, 1]} : vector<8x128xf32> to vector<1x128xf32>
    %cst_94 = arith.constant dense<0.000000e+00> : vector<1x256xf32>
    %158 = tpu.matmul %157, %156, %cst_94 {dimension_numbers = #tpu.dot_dimension_numbers<[1], [0], [0], [1], [0, 0, 1, 1], [], []>} : vector<1x128xf32>, vector<128x256xf32>, vector<1x256xf32> -> vector<1x256xf32>
    %159 = arith.addf %155, %158 : vector<1x256xf32>
    %c1568 = arith.constant 1568 : index
    %c0_95 = arith.constant 0 : index
    %160 = vector.load %arg1[%c1568, %c0_95] : memref<2736x256xf32, #tpu.memory_space<vmem>>, vector<128x256xf32>
    %161 = vector.extract_strided_slice %154 {offsets = [1, 0], sizes = [1, 128], strides = [1, 1]} : vector<8x128xf32> to vector<1x128xf32>
    %cst_96 = arith.constant dense<0.000000e+00> : vector<1x256xf32>
    %162 = tpu.matmul %161, %160, %cst_96 {dimension_numbers = #tpu.dot_dimension_numbers<[1], [0], [0], [1], [0, 0, 1, 1], [], []>} : vector<1x128xf32>, vector<128x256xf32>, vector<1x256xf32> -> vector<1x256xf32>
    %163 = arith.addf %159, %162 : vector<1x256xf32>
    %c1696 = arith.constant 1696 : index
    %c0_97 = arith.constant 0 : index
    %164 = vector.load %arg1[%c1696, %c0_97] : memref<2736x256xf32, #tpu.memory_space<vmem>>, vector<128x256xf32>
    %165 = vector.extract_strided_slice %154 {offsets = [2, 0], sizes = [1, 128], strides = [1, 1]} : vector<8x128xf32> to vector<1x128xf32>
    %cst_98 = arith.constant dense<0.000000e+00> : vector<1x256xf32>
    %166 = tpu.matmul %165, %164, %cst_98 {dimension_numbers = #tpu.dot_dimension_numbers<[1], [0], [0], [1], [0, 0, 1, 1], [], []>} : vector<1x128xf32>, vector<128x256xf32>, vector<1x256xf32> -> vector<1x256xf32>
    %167 = arith.addf %163, %166 : vector<1x256xf32>
    %c1824 = arith.constant 1824 : index
    %c0_99 = arith.constant 0 : index
    %168 = vector.load %arg1[%c1824, %c0_99] : memref<2736x256xf32, #tpu.memory_space<vmem>>, vector<128x256xf32>
    %169 = vector.extract_strided_slice %154 {offsets = [3, 0], sizes = [1, 128], strides = [1, 1]} : vector<8x128xf32> to vector<1x128xf32>
    %cst_100 = arith.constant dense<0.000000e+00> : vector<1x256xf32>
    %170 = tpu.matmul %169, %168, %cst_100 {dimension_numbers = #tpu.dot_dimension_numbers<[1], [0], [0], [1], [0, 0, 1, 1], [], []>} : vector<1x128xf32>, vector<128x256xf32>, vector<1x256xf32> -> vector<1x256xf32>
    %171 = arith.addf %167, %170 : vector<1x256xf32>
    %c1952 = arith.constant 1952 : index
    %c0_101 = arith.constant 0 : index
    %172 = vector.load %arg1[%c1952, %c0_101] : memref<2736x256xf32, #tpu.memory_space<vmem>>, vector<128x256xf32>
    %173 = vector.extract_strided_slice %154 {offsets = [4, 0], sizes = [1, 128], strides = [1, 1]} : vector<8x128xf32> to vector<1x128xf32>
    %cst_102 = arith.constant dense<0.000000e+00> : vector<1x256xf32>
    %174 = tpu.matmul %173, %172, %cst_102 {dimension_numbers = #tpu.dot_dimension_numbers<[1], [0], [0], [1], [0, 0, 1, 1], [], []>} : vector<1x128xf32>, vector<128x256xf32>, vector<1x256xf32> -> vector<1x256xf32>
    %175 = arith.addf %171, %174 : vector<1x256xf32>
    %c2080 = arith.constant 2080 : index
    %c0_103 = arith.constant 0 : index
    %176 = vector.load %arg1[%c2080, %c0_103] : memref<2736x256xf32, #tpu.memory_space<vmem>>, vector<128x256xf32>
    %177 = vector.extract_strided_slice %154 {offsets = [5, 0], sizes = [1, 128], strides = [1, 1]} : vector<8x128xf32> to vector<1x128xf32>
    %cst_104 = arith.constant dense<0.000000e+00> : vector<1x256xf32>
    %178 = tpu.matmul %177, %176, %cst_104 {dimension_numbers = #tpu.dot_dimension_numbers<[1], [0], [0], [1], [0, 0, 1, 1], [], []>} : vector<1x128xf32>, vector<128x256xf32>, vector<1x256xf32> -> vector<1x256xf32>
    %179 = arith.addf %175, %178 : vector<1x256xf32>
    %c2208 = arith.constant 2208 : index
    %c0_105 = arith.constant 0 : index
    %180 = vector.load %arg1[%c2208, %c0_105] : memref<2736x256xf32, #tpu.memory_space<vmem>>, vector<128x256xf32>
    %181 = vector.extract_strided_slice %154 {offsets = [6, 0], sizes = [1, 128], strides = [1, 1]} : vector<8x128xf32> to vector<1x128xf32>
    %cst_106 = arith.constant dense<0.000000e+00> : vector<1x256xf32>
    %182 = tpu.matmul %181, %180, %cst_106 {dimension_numbers = #tpu.dot_dimension_numbers<[1], [0], [0], [1], [0, 0, 1, 1], [], []>} : vector<1x128xf32>, vector<128x256xf32>, vector<1x256xf32> -> vector<1x256xf32>
    %183 = arith.addf %179, %182 : vector<1x256xf32>
    %c2336 = arith.constant 2336 : index
    %c0_107 = arith.constant 0 : index
    %184 = vector.load %arg1[%c2336, %c0_107] : memref<2736x256xf32, #tpu.memory_space<vmem>>, vector<128x256xf32>
    %185 = vector.extract_strided_slice %154 {offsets = [7, 0], sizes = [1, 128], strides = [1, 1]} : vector<8x128xf32> to vector<1x128xf32>
    %cst_108 = arith.constant dense<0.000000e+00> : vector<1x256xf32>
    %186 = tpu.matmul %185, %184, %cst_108 {dimension_numbers = #tpu.dot_dimension_numbers<[1], [0], [0], [1], [0, 0, 1, 1], [], []>} : vector<1x128xf32>, vector<128x256xf32>, vector<1x256xf32> -> vector<1x256xf32>
    %187 = arith.addf %183, %186 : vector<1x256xf32>
    %cst_109 = arith.constant 0.636619746 : f32
    %188 = math.sqrt %cst_109 : f32
    %cst_110 = arith.constant 5.000000e-01 : f32
    %189 = vector.broadcast %cst_110 : f32 to vector<1x256xf32>
    %190 = arith.mulf %189, %187 : vector<1x256xf32>
    %cst_111 = arith.constant 4.471500e-02 : f32
    %191 = vector.broadcast %cst_111 : f32 to vector<1x256xf32>
    %192 = arith.mulf %191, %187 : vector<1x256xf32>
    %193 = arith.mulf %192, %187 : vector<1x256xf32>
    %194 = arith.mulf %193, %187 : vector<1x256xf32>
    %195 = arith.addf %187, %194 : vector<1x256xf32>
    %196 = vector.broadcast %188 : f32 to vector<1x256xf32>
    %197 = arith.mulf %196, %195 : vector<1x256xf32>
    %198 = math.tanh %197 : vector<1x256xf32>
    %cst_112 = arith.constant 1.000000e+00 : f32
    %199 = vector.broadcast %cst_112 : f32 to vector<1x256xf32>
    %200 = arith.addf %199, %198 : vector<1x256xf32>
    %201 = arith.mulf %190, %200 : vector<1x256xf32>
    %c2472 = arith.constant 2472 : index
    %c0_113 = arith.constant 0 : index
    %202 = vector.load %arg1[%c2472, %c0_113] : memref<2736x256xf32, #tpu.memory_space<vmem>>, vector<256x128xf32>
    %cst_114 = arith.constant dense<0.000000e+00> : vector<1x128xf32>
    %203 = tpu.matmul %201, %202, %cst_114 {dimension_numbers = #tpu.dot_dimension_numbers<[1], [0], [0], [1], [0, 0, 1, 1], [], []>} : vector<1x256xf32>, vector<256x128xf32>, vector<1x128xf32> -> vector<1x128xf32>
    %c2728 = arith.constant 2728 : index
    %c0_115 = arith.constant 0 : index
    %204 = vector.load %arg1[%c2728, %c0_115] : memref<2736x256xf32, #tpu.memory_space<vmem>>, vector<1x128xf32>
    %205 = arith.addf %203, %204 : vector<1x128xf32>
    %206 = vector.shape_cast %205 : vector<1x128xf32> to vector<1x128xf32>
    %207 = vector.broadcast %206 : vector<1x128xf32> to vector<8x128xf32>
    %c0_116 = arith.constant 0 : index
    %c0_117 = arith.constant 0 : index
    %208 = vector.load %arg2[%c0_116, %c0_117] : memref<8x128xf32, #tpu.memory_space<vmem>>, vector<8x128xf32>
    tpu.vector_store %arg2[%c0_116, %c0_117], %207 {strides = array<i32>} : memref<8x128xf32, #tpu.memory_space<vmem>>, vector<8x128xf32>,
    return
  }
}

</mosaic_0001>

<bundles_post_ra>
// kernel: tpu_custom_call.1
= control target key start
LH: loop header
LB: loop body
LE: loop exit
PB: predicated region body
PF: predicated region fallthrough
CT: control target
= control target key end

     0   :  { %7 = vsyncpa [#allocation3], 0  ;;  %s5675_s0 = inlined_call_operand.vmem [shape: f32[32,4], index: 0, kind: input, shape index: {}]   ;;  %s5676_s1 = inlined_call_operand.hbm [shape: f32[2736,256], index: 1, kind: input, shape index: {}]   ;;  %s5677_s2 = inlined_call_operand.hbm [shape: f32[8,128], index: 2, kind: output, shape index: {}]  }
   0x1   :  { %8 = vsyncpa [#allocation4], 0  ;;  %s5393_s9 = smov [#allocation2]   ;;  %s5345_s13 = scalar_lea.hbm %s5676_s1, 87552 }
   0x2   :  { %s16_s10 = sshll.u32 %s5393_s9, 4  ;;  %p5346_p0 = scmp.ne.s32.totalorder %s5676_s1, %s5345_s13  ;;  %s17_s10 = int_to_ptr.vmem [resolvable:$true] %s16_s10 }
   0x3   :  { %p5349_p1 = scmp.lt.u32.totalorder %s5345_s13, %s5676_s1 }
   0x5   :  { %p5351_p2 = pnand %p5349_p1, %p5346_p0 }
   0x7   :  { %5354 = shalt.err (!%p5351_p2)
}
   0x8   :  { %s5355_s18 = scalar_lea.vmem %s17_s10, 87552  ;;  %p5360_p4 = scmp.lt.s32.totalorder %s17_s10, %s17_s10 }
   0x9   :  { %p5356_p3 = scmp.ne.s32.totalorder %s17_s10, %s5355_s18  ;;  %p5361_p5 = scmp.lt.s32.totalorder %s5355_s18, %s5355_s18 }
   0xb   :  { %p5362_p6 = por %p5361_p5, %p5360_p4 }
   0xd   :  { %p5363_p7 = pnand %p5362_p6, %p5356_p3 }
   0xf   :  { %5366 = shalt.err (!%p5363_p7)
}
  0x10   :  { %s5394_s19 = smov 256   ;;  %s5395_s20 = smov 16  }
  0x11   :  { %22 = dma.hbm_to_vmem [thread:$0]  %s5676_s1, 87552, %s17_s10, [#allocation3], %s5394_s19, %s5394_s19, %s5395_s20  }
  0x12   :  { %5389 = dma.done.wait [#allocation3], 87552  }
  0x13   :  { %5390 = vsyncadd [#allocation3], 4294879744  ;;  %v5396_v0 = vmov 0   ;;  %vm50_vm0 = vcmask 261120   ;;  %v34_v1 = vld [vmem:[%s5675_s0] sm:$0xff]  ;;  %v35_v2 = vld [vmem:[%s5675_s0 + $0x8] sm:$0xff] }
  0x14   :  { %5330 = vset.pattern.permute.xlu0 %v5396_v0  ;;  %v36_v3 = vld [vmem:[%s5675_s0 + $0x10] sm:$0xff]  ;;  %v4728_v4 = vpack.c.bf16 %v35_v2, %v34_v1  ;;  %v37_v5 = vld [vmem:[%s5675_s0 + $0x18] sm:$0xff]  ;;  %v32_v6 = vld [vmem:[#allocation2 + $0x80] sm:$0xff]  ;;  %vm322_vm1 = vcmask 1043456   ;;  %vm150_vm2 = vcmask 130048   ;;  %vm315_vm3 = vcmask 31744  }
  0x15   :  { %v4732_v7 = vpack.c.bf16 %v37_v5, %v36_v3  ;;  %4273 = vmatprep.mubr.msk.f32.mxu0 %vm50_vm0, %v32_v6  ;;  %v38_v8 = vld [vmem:[#allocation2 + $0xa0] sm:$0xff]  ;;  %v39_v9 = vld [vmem:[#allocation2 + $0xb0] sm:$0xff]  ;;  %vm741_vm4 = vcmask 523264   ;;  %vm5398_vm5 = vmmov 0   ;;  %vm1518_vm6 = vcmask 64512   ;;  %s5401_s0 = smov [#allocation5]  }
  0x16   :  { %4729 = vmatprep.subr.bf16.mxu0 %v4728_v4  ;;  %42 = vperm.xlu0 %5330, %v38_v8   ;;  %v33_v10 = vld [vmem:[#allocation2 + $0x90] sm:$0xff]  ;;  %v5445_v12 = vld [vmem:[#allocation2] sm:$0xff]  ;;  %s3942_s30 = sshll.u32 %s5401_s0, 4  ;;  %s3943_s30 = int_to_ptr.vmem [resolvable:$true] %s3942_s30 }
  0x17   :  { %4731 = vmatpush3.bf16.msra.mxu0 %v4728_v4  ;;  %v314_v11 = vld [vmem:[#allocation2 + $0xd0] sm:$0xf]  ;;  %4280 = vmatprep.mubr.msk.f32.mxu1 %vm150_vm2, %v5445_v12  ;;  %v313_v13 = vld [vmem:[#allocation2 + $0xc0] sm:$0xf]  ;;  %s5367_s3 = scalar_lea.vmem %s3943_s30, 128  ;;  %p5372_p9 = scmp.lt.s32.totalorder %s3943_s30, %s3943_s30 }
  0x18   :  { %4733 = vmatprep.subr.bf16.mxu0 %v4732_v7  ;;  %v5453_v39 = vld [vmem:[#allocation2 + $0x10] sm:$0xff]  ;;  %v5455_v40 = vld [vmem:[#allocation2 + $0x20] sm:$0xff]  ;;  %p5368_p8 = scmp.ne.s32.totalorder %s3943_s30, %s5367_s3  ;;  %p5373_p10 = scmp.lt.s32.totalorder %s5367_s3, %s5367_s3 }
  0x19   :  { %v5461_v41 = vld [vmem:[#allocation2 + $0x30] sm:$0xff]  ;;  %v485_v42 = vld [vmem:[#allocation2 + $0xe0] sm:$0xf] }
  0x1a   :  { %47 = vperm.xlu0 %5330, %v39_v9   ;;  %v733_v43 = vld [vmem:[#allocation2 + $0x180] sm:$0xff]  ;;  %v734_v44 = vld [vmem:[#allocation2 + $0x190] sm:$0xff]  ;;  %p5374_p11 = por %p5373_p10, %p5372_p9 }
  0x1b   :  { %4735 = vmatpush3.bf16.msra.mxu0 %v4732_v7  ;;  %v4752_v47 = vpack.c.bf16 %v734_v44, %v733_v43  ;;  %v735_v50 = vld [vmem:[#allocation2 + $0x1a0] sm:$0xff]  ;;  %v736_v51 = vld [vmem:[#allocation2 + $0x1b0] sm:$0xff] }
  0x1c   :  { %4290 = vmatprep.subr.msk.mxu0 %vm322_vm1, %v314_v11  ;;  %v4756_v52 = vpack.c.bf16 %v736_v51, %v735_v50  ;;  %v737_v53 = vld [vmem:[#allocation2 + $0x1c0] sm:$0xff]  ;;  %v738_v54 = vld [vmem:[#allocation2 + $0x1d0] sm:$0xff]  ;;  %p5375_p12 = pnand %p5374_p11, %p5368_p8 }
  0x1d   :  { %v4760_v55 = vpack.c.bf16 %v738_v54, %v737_v53  ;;  %v739_v56 = vld [vmem:[#allocation2 + $0x1e0] sm:$0xff]  ;;  %v740_v57 = vld [vmem:[#allocation2 + $0x1f0] sm:$0xff] }
  0x1e   :  { %4274 = vmatmul.mubr.msk.f32.vlgmr.msra.gmra.mrb[0].mxu0 %vm50_vm0, %v33_v10  ;;  %v4764_v58 = vpack.c.bf16 %v740_v57, %v739_v56  ;;  %v572_v59 = vld [vmem:[#allocation2 + $0xf0] ss:$0 sm:$0xff]  ;;  %v725_v1 = vld [vmem:[#allocation2 + $0x100] sm:$0xff] }
  0x1f   :  { %4291 = vmatpush3.msk.msra.mxu0 %vm322_vm1, %v314_v11  ;;  %v726_v2 = vld [vmem:[#allocation2 + $0x110] sm:$0xff]  ;;  %v727_v4 = vld [vmem:[#allocation2 + $0x120] sm:$0xff] }
  0x20   :  { %4295 = vmatprep.subr.msk.mxu0 %vm322_vm1, %v313_v13  ;;  %v4768_v3 = vpack.c.bf16 %v726_v2, %v725_v1  ;;  %v728_v5 = vld [vmem:[#allocation2 + $0x130] sm:$0xff]  ;;  %v729_v7 = vld [vmem:[#allocation2 + $0x140] sm:$0xff] }
  0x21   :  { %v4772_v6 = vpack.c.bf16 %v728_v5, %v727_v4  ;;  %v730_v8 = vld [vmem:[#allocation2 + $0x150] sm:$0xff]  ;;  %v731_v10 = vld [vmem:[#allocation2 + $0x160] sm:$0xff] }
  0x22   :  { %v4776_v9 = vpack.c.bf16 %v730_v8, %v729_v7  ;;  %v732_v11 = vld [vmem:[#allocation2 + $0x170] sm:$0xff]  ;;  %v1163_v51 = vld [vmem:[#allocation2 + $0x360] sm:$0xff] }
  0x23   :  { %v1158_v44 = vld [vmem:[#allocation2 + $0x310] sm:$0xff]  ;;  %v1165_v54 = vld [vmem:[#allocation2 + $0x380] sm:$0xff] }
  0x24   :  { %v1162_v50 = vld [vmem:[#allocation2 + $0x350] sm:$0xff]  ;;  %v1151_v56 = vld [vmem:[#allocation2 + $0x2a0] sm:$0xff] }
  0x25   :  { %v1164_v53 = vld [vmem:[#allocation2 + $0x370] sm:$0xff]  ;;  %v1157_v1 = vld [vmem:[#allocation2 + $0x300] sm:$0xff] }
  0x26   :  { %v1152_v57 = vld [vmem:[#allocation2 + $0x2b0] sm:$0xff]  ;;  %v1329_v4 = vld [vmem:[#allocation2 + $0x3a0] sm:$0xff] }
  0x27   :  { %v1331_v7 = vld [vmem:[#allocation2 + $0x3c0] sm:$0xff] }
  0x95   :  { %v43_v14 = vpop.permute.xlu0 %42 }
  0x99   :  { %v48_v15 = vpop.permute.xlu0 %47 }
  0xf1   :  { %v4275_v16 = vpop.f32.mrb[0].mxu0 }
  0xf2   :  { %v129_v17 = vadd.f32 %v4275_v16, %v48_v15  ;;  %v123_v18 = vpop.f32.mrb[1].mxu0 }
  0xf3   :  { %v124_v19 = vadd.f32 %v123_v18, %v43_v14  ;;  %v905_v14 = vld [vmem:[#allocation2 + $0x210] sm:$0xff]  ;;  %v906_v18 = vld [vmem:[#allocation2 + $0x220] sm:$0xff] }
  0xf4   :  { %v135_v20 = vmul.f32 0.044715, %v129_v17  ;;  %v133_v32 = vmul.f32 0.5, %v129_v17 }
  0xf5   :  { %v134_v21 = vmul.f32 0.044715, %v124_v19  ;;  %v132_v34 = vmul.f32 0.5, %v124_v19 }
  0xf6   :  { %v137_v22 = vmul.f32 %v135_v20, %v129_v17 }
  0xf7   :  { %v136_v23 = vmul.f32 %v134_v21, %v124_v19 }
  0xf8   :  { %v139_v24 = vmul.f32 %v137_v22, %v129_v17 }
  0xf9   :  { %v138_v25 = vmul.f32 %v136_v23, %v124_v19  ;;  %v908_v23 = vld [vmem:[#allocation2 + $0x240] sm:$0xff] }
  0xfa   :  { %v141_v26 = vadd.f32 %v139_v24, %v129_v17  ;;  %v909_v24 = vld [vmem:[#allocation2 + $0x250] sm:$0xff] }
  0xfb   :  { %v140_v27 = vadd.f32 %v138_v25, %v124_v19  ;;  %v907_v19 = vld [vmem:[#allocation2 + $0x230] sm:$0xff] }
  0xfc   :  { %v143_v28 = vmul.f32 0.7978845, %v141_v26  ;;  %v4788_v22 = vpack.c.bf16 %v907_v19, %v906_v18  ;;  %v4792_v26 = vpack.c.bf16 %v909_v24, %v908_v23  ;;  %v1433_v19 = vld [vmem:[#allocation2 + $0x420] sm:$0xff]  ;;  %v1436_v24 = vld [vmem:[#allocation2 + $0x450] sm:$0xff] }
  0xfd   :  { %v142_v29 = vmul.f32 0.7978845, %v140_v27  ;;  %v1435_v23 = vld [vmem:[#allocation2 + $0x440] sm:$0xff] }
  0xfe   :  { %5331 = vtanh.f32 %v143_v28  ;;  %v910_v28 = vld [vmem:[#allocation2 + $0x260] sm:$0xff] }
  0xff   :  { %5333 = vtanh.f32 %v142_v29  ;;  %v911_v29 = vld [vmem:[#allocation2 + $0x270] sm:$0xff] }
 0x108   :  { %v5332_v30 = vpop.eup %5331 }
 0x109   :  { %v5334_v31 = vpop.eup %5333  ;;  %v147_v33 = vadd.f32 1.0, %v5332_v30  ;;  %v4796_v30 = vpack.c.bf16 %v911_v29, %v910_v28  ;;  %v1439_v29 = vld [vmem:[#allocation2 + $0x480] sm:$0xff] }
 0x10a   :  { %v146_v35 = vadd.f32 1.0, %v5334_v31 }
 0x10b   :  { %v149_v36 = vmul.f32 %v147_v33, %v133_v32  ;;  %v995_v32 = vld [vmem:[#allocation2 + $0x280] ss:$0 sm:$0xff] }
 0x10c   :  { %v148_v37 = vmul.f32 %v146_v35, %v132_v34 }
 0x10e   :  { %4292 = vmatprep.mubr.msk.f32.mxu0 %vm315_vm3, %v148_v37  ;;  %v4736_v38 = vpack.c.bf16 %v149_v36, %v148_v37 }
 0x10f   :  { %4293 = vmatmul.mubr.msk.f32.vlgmr.msra.gmra.mrb[2].mxu0 %vm315_vm3, %v149_v36 }
 0x110   :  { %4737 = vmatprep.subr.bf16.mxu1 %v4736_v38  ;;  %4296 = vmatpush3.msk.msra.mxu0 %vm322_vm1, %v313_v13  ;;  %v904_v13 = vld [vmem:[#allocation2 + $0x200] sm:$0xff] }
 0x111   :  { %4739 = vmatpush3.bf16.msra.mxu1 %v4736_v38  ;;  %4300 = vmatprep.subr.msk.mxu0 %vm322_vm1, %v485_v42  ;;  %v4784_v15 = vpack.c.bf16 %v905_v14, %v904_v13 }
 0x112   :  { %4741 = vmatprep.subr.bf16.mxu1 %v4736_v38 }
 0x114   :  { %4281 = vmatmul.mubr.msk.f32.vlgmr.msra.gmra.mrb[0].mxu1 %vm150_vm2, %v5453_v39 }
 0x115   :  { %4743 = vmatpush3.bf16.msra.mxu1 %v4736_v38  ;;  %4287 = vmatprep.mubr.msk.f32.mxu1 %vm150_vm2, %v5455_v40 }
 0x118   :  { %4288 = vmatmul.mubr.msk.f32.vlgmr.msra.gmra.mrb[2].mxu1 %vm150_vm2, %v5461_v41 }
 0x119   :  { %4309 = vmatprep.mubr.msk.f32.mxu1 %vm150_vm2, %v5445_v12 }
 0x1e7   :  { %v4282_v45 = vpop.f32.mrb[0].mxu1 }
 0x1e8   :  { %v223_v46 = vpop.f32.mrb[1].mxu1 }
 0x1e9   :  { %4297 = vmatprep.mubr.msk.f32.mxu0 %vm315_vm3, %v223_v46 }
 0x1ea   :  { %4298 = vmatmul.mubr.msk.f32.vlgmr.msra.gmra.mrb[2].mxu0 %vm315_vm3, %v4282_v45  ;;  %v1159_v45 = vld [vmem:[#allocation2 + $0x320] sm:$0xff] }
 0x1eb   :  { %4301 = vmatpush3.msk.msra.mxu0 %vm322_vm1, %v485_v42  ;;  %v4289_v48 = vpop.f32.mrb[2].mxu1  ;;  %v4808_v46 = vpack.c.bf16 %v1159_v45, %v1158_v44 }
 0x1ec   :  { %v304_v49 = vpop.f32.mrb[3].mxu1  ;;  %4753 = vmatprep.subr.bf16.mxu0 %v4752_v47 }
 0x1ed   :  { %4302 = vmatprep.mubr.msk.f32.mxu0 %vm315_vm3, %v304_v49 }
 0x1f2   :  { %4303 = vmatmul.mubr.msk.f32.vlgmr.msra.gmra.mrb[2].mxu0 %vm315_vm3, %v4289_v48  ;;  %v1161_v48 = vld [vmem:[#allocation2 + $0x340] sm:$0xff] }
 0x1f3   :  { %4755 = vmatpush3.bf16.msra.mxu0 %v4752_v47  ;;  %v1160_v47 = vld [vmem:[#allocation2 + $0x330] sm:$0xff] }
 0x1f4   :  { %4757 = vmatprep.subr.bf16.mxu0 %v4756_v52  ;;  %v4812_v49 = vpack.c.bf16 %v1161_v48, %v1160_v47 }
 0x1f7   :  { %4759 = vmatpush3.bf16.msra.mxu0 %v4756_v52  ;;  %v4816_v52 = vpack.c.bf16 %v1163_v51, %v1162_v50  ;;  %v1516_v51 = vld [vmem:[#allocation2 + $0x4b0] sm:$0xff] }
 0x1f8   :  { %4761 = vmatprep.subr.bf16.mxu0 %v4760_v55 }
 0x1fb   :  { %4763 = vmatpush3.bf16.msra.mxu0 %v4760_v55  ;;  %v1150_v55 = vld [vmem:[#allocation2 + $0x290] sm:$0xff] }
 0x1fc   :  { %4765 = vmatprep.subr.bf16.mxu0 %v4764_v58 }
 0x1ff   :  { %4767 = vmatpush3.bf16.msra.mxu0 %v4764_v58  ;;  %v1153_v58 = vld [vmem:[#allocation2 + $0x2c0] sm:$0xff] }
 0x2c5   :  { %v4304_v60 = vpop.f32.mrb[2].mxu0 }
 0x2c6   :  { %v5473_v61 = vadd.f32 %v4304_v60, %v572_v59  ;;  %v561_v62 = vpop.f32.mrb[3].mxu0  ;;  %v1155_v60 = vld [vmem:[#allocation2 + $0x2e0] sm:$0xff] }
 0x2c7   :  { %v5475_v63 = vadd.f32 %v572_v59, %v561_v62  ;;  %v1154_v59 = vld [vmem:[#allocation2 + $0x2d0] sm:$0xff] }
 0x2c8   :  { %v4832_v62 = vpack.c.bf16 %v1155_v60, %v1154_v59 }
 0x2c9   :  { %v4744_v0 = vpack.c.bf16 %v5473_v61, %v5475_v63  ;;  %4335 = vmatprep.mubr.msk.f32.mxu0 %vm741_vm4, %v5475_v63 }
 0x2ca   :  { %4336 = vmatmul.mubr.msk.f32.vlgmr.msra.gmra.mrb[4].mxu0 %vm741_vm4, %v5473_v61 }
 0x2cb   :  { %4745 = vmatprep.subr.bf16.mxu1 %v4744_v0  ;;  %4380 = vmatprep.mubr.msk.f32.mxu0 %vm150_vm2, %v5445_v12  ;;  %v4780_v12 = vpack.c.bf16 %v732_v11, %v731_v10  ;;  %v1332_v11 = vld [vmem:[#allocation2 + $0x3d0] sm:$0xff] }
 0x2cc   :  { %4747 = vmatpush3.bf16.msra.mxu1 %v4744_v0 }
 0x2cd   :  { %4749 = vmatprep.subr.bf16.mxu1 %v4744_v0 }
 0x2cf   :  { %4310 = vmatmul.mubr.msk.f32.vlgmr.msra.gmra.mrb[4].mxu1 %vm150_vm2, %v5453_v39 }
 0x2d0   :  { %4751 = vmatpush3.bf16.msra.mxu1 %v4744_v0  ;;  %4316 = vmatprep.mubr.msk.f32.mxu1 %vm150_vm2, %v5455_v40  ;;  %v1156_v0 = vld [vmem:[#allocation2 + $0x2f0] sm:$0xff] }
 0x2d1   :  { %4769 = vmatprep.subr.bf16.mxu1 %v4768_v3  ;;  %v4836_v2 = vpack.c.bf16 %v1157_v1, %v1156_v0  ;;  %v1598_v0 = vlaneseq }
 0x2d3   :  { %4317 = vmatmul.mubr.msk.f32.vlgmr.msra.gmra.mrb[6].mxu1 %vm150_vm2, %v5461_v41  ;;  %v5526_v1 = vshrl.u32 %v1598_v0, 7 }
 0x2d4   :  { %4771 = vmatpush3.bf16.msra.mxu1 %v4768_v3  ;;  %v1328_v3 = vld [vmem:[#allocation2 + $0x390] sm:$0xff] }
 0x2d5   :  { %4773 = vmatprep.subr.bf16.mxu1 %v4772_v6  ;;  %v4840_v5 = vpack.c.bf16 %v1329_v4, %v1328_v3 }
 0x2d8   :  { %4775 = vmatpush3.bf16.msra.mxu1 %v4772_v6  ;;  %v1330_v6 = vld [vmem:[#allocation2 + $0x3b0] sm:$0xff] }
 0x2d9   :  { %4777 = vmatprep.subr.bf16.mxu1 %v4776_v9  ;;  %v4844_v10 = vpack.c.bf16 %v1331_v7, %v1330_v6 }
 0x2dc   :  { %4779 = vmatpush3.bf16.msra.mxu1 %v4776_v9 }
 0x2dd   :  { %4781 = vmatprep.subr.bf16.mxu1 %v4780_v12 }
 0x2e0   :  { %4783 = vmatpush3.bf16.msra.mxu1 %v4780_v12  ;;  %v1333_v12 = vld [vmem:[#allocation2 + $0x3e0] sm:$0xff] }
 0x2e1   :  { %4785 = vmatprep.subr.bf16.mxu1 %v4784_v15  ;;  %v4848_v14 = vpack.c.bf16 %v1333_v12, %v1332_v11  ;;  %v1757_v11 = vld [vmem:[#allocation2 + $0xab0] sm:$0xff]  ;;  %v1758_v12 = vld [vmem:[#allocation2 + $0xac0] sm:$0xff] }
 0x39d   :  { %v4337_v16 = vpop.f32.mrb[4].mxu0 }
 0x39e   :  { %v814_v17 = vpop.f32.mrb[5].mxu0 }
 0x3a2   :  { %v4311_v20 = vpop.f32.mrb[4].mxu1 }
 0x3a3   :  { %v641_v21 = vpop.f32.mrb[5].mxu1 }
 0x3a4   :  { %4354 = vmatprep.mubr.msk.f32.mxu1 %vm741_vm4, %v641_v21 }
 0x3a5   :  { %4355 = vmatmul.mubr.msk.f32.vlgmr.msra.gmra.mrb[8].mxu1 %vm741_vm4, %v4311_v20  ;;  %v1434_v20 = vld [vmem:[#allocation2 + $0x430] sm:$0xff] }
 0x3a6   :  { %4787 = vmatpush3.bf16.msra.mxu1 %v4784_v15  ;;  %v4318_v25 = vpop.f32.mrb[6].mxu1  ;;  %v4857_v21 = vpack.c.bf16 %v1434_v20, %v1433_v19  ;;  %v1762_v19 = vld [vmem:[#allocation2 + $0xb00] sm:$0xff] }
 0x3a7   :  { %4789 = vmatprep.subr.bf16.mxu1 %v4788_v22  ;;  %v716_v27 = vpop.f32.mrb[7].mxu1 }
 0x3a8   :  { %4373 = vmatprep.mubr.msk.f32.mxu1 %vm741_vm4, %v716_v27  ;;  %v1438_v27 = vld [vmem:[#allocation2 + $0x470] sm:$0xff] }
 0x3aa   :  { %4791 = vmatpush3.bf16.msra.mxu1 %v4788_v22  ;;  %v5397_v22 = vmov 0.0|0.0  }
 0x3ab   :  { %4793 = vmatprep.subr.bf16.mxu1 %v4792_v26 }
 0x3ae   :  { %4795 = vmatpush3.bf16.msra.mxu1 %v4792_v26  ;;  %v1437_v26 = vld [vmem:[#allocation2 + $0x460] sm:$0xff] }
 0x3af   :  { %4797 = vmatprep.subr.bf16.mxu1 %v4796_v30  ;;  %v4863_v28 = vpack.c.bf16 %v1438_v27, %v1437_v26  ;;  %v1986_v26 = vld [vmem:[#allocation2 + $0x4e0] sm:$0xff] }
 0x3b2   :  { %4799 = vmatpush3.bf16.msra.mxu1 %v4796_v30  ;;  %v1440_v30 = vld [vmem:[#allocation2 + $0x490] sm:$0xff] }
 0x3b3   :  { %4856 = vmatprep.subr.bf16.mxu1 %v5397_v22 }
 0x3b5   :  { %4374 = vmatmul.mubr.msk.f32.vlgmr.msra.gmra.mrb[8].mxu1 %vm741_vm4, %v4318_v25  ;;  %v4860_v25 = vpack.c.bf16 %v1436_v24, %v1435_v23  ;;  %v1764_v23 = vld [vmem:[#allocation2 + $0xb20] sm:$0xff] }
 0x3b6   :  { %4858 = vmatpush3.bf16.msra.mxu1 %v4857_v21  ;;  %v1763_v21 = vld [vmem:[#allocation2 + $0xb10] sm:$0xff] }
 0x3b7   :  { %4859 = vmatprep.subr.bf16.mxu1 %v5397_v22  ;;  %v4884_v24 = vpack.c.bf16 %v1764_v23, %v1763_v21  ;;  %v2373_v21 = vld [vmem:[#allocation2 + $0x6a0] sm:$0xff]  ;;  %v2374_v23 = vld [vmem:[#allocation2 + $0x6b0] sm:$0xff] }
 0x3ba   :  { %4861 = vmatpush3.bf16.msra.mxu1 %v4860_v25  ;;  %v1985_v25 = vld [vmem:[#allocation2 + $0x4d0] sm:$0xff] }
 0x3bb   :  { %4862 = vmatprep.subr.bf16.mxu1 %v5397_v22 }
 0x3be   :  { %4864 = vmatpush3.bf16.msra.mxu1 %v4863_v28 }
 0x3bf   :  { %4865 = vmatprep.subr.bf16.mxu1 %v5397_v22 }
 0x488   :  { %v4375_v31 = vpop.f32.mrb[8].mxu1 }
 0x489   :  { %v5309_v33 = vadd.f32 %v4375_v31, %v4337_v16  ;;  %v984_v34 = vpop.f32.mrb[9].mxu1  ;;  %v1334_v16 = vld [vmem:[#allocation2 + $0x3f0] sm:$0xff]  ;;  %v4866_v31 = vpack.c.bf16 %v1440_v30, %v1439_v29 }
 0x48a   :  { %v5310_v35 = vadd.f32 %v984_v34, %v814_v17  ;;  %v1335_v17 = vld [vmem:[#allocation2 + $0x400] sm:$0xff] }
 0x48b   :  { %v997_v36 = vadd.f32 %v5309_v33, %v995_v32  ;;  %v4852_v18 = vpack.c.bf16 %v1335_v17, %v1334_v16  ;;  %4867 = vmatpush3.bf16.msra.mxu1 %v4866_v31  ;;  %v1419_v33 = vld [vmem:[#allocation2 + $0x410] ss:$0 sm:$0xff]  ;;  %v4875_v16 = vpack.c.bf16 %v1758_v12, %v1757_v11 }
 0x48c   :  { %v996_v37 = vadd.f32 %v5310_v35, %v995_v32  ;;  %4871 = vmatprep.subr.bf16.mxu1 %v5397_v22  ;;  %v5399_v32 = vmov 0.0   ;;  %v1759_v17 = vld [vmem:[#allocation2 + $0xad0] sm:$0xff] }
 0x48d   :  { %v999_v38 = vmax.f32 %v997_v36, 0.0  ;;  %4463 = vmatprep.mubr.msk.f32.mxu1 %vm5398_vm5, %v5399_v32 }
 0x48e   :  { %v998_v42 = vmax.f32 %v996_v37, 0.0 }
 0x490   :  { %v4800_v43 = vpack.c.bf16 %v999_v38, %v998_v42 }
 0x492   :  { %4801 = vmatprep.subr.bf16.mxu0 %v4800_v43 }
 0x493   :  { %4803 = vmatpush3.bf16.msra.mxu0 %v4800_v43 }
 0x494   :  { %4805 = vmatprep.subr.bf16.mxu0 %v4800_v43 }
 0x496   :  { %4381 = vmatmul.mubr.msk.f32.vlgmr.msra.gmra.mrb[6].mxu0 %vm150_vm2, %v5453_v39  ;;  %v4820_v39 = vpack.c.bf16 %v1165_v54, %v1164_v53 }
 0x497   :  { %4807 = vmatpush3.bf16.msra.mxu0 %v4800_v43  ;;  %4387 = vmatprep.mubr.msk.f32.mxu0 %vm150_vm2, %v5455_v40  ;;  %v4824_v40 = vpack.c.bf16 %v1151_v56, %v1150_v55  ;;  %v1517_v56 = vld [vmem:[#allocation2 + $0x4c0] ss:$0 sm:$0xff] }
 0x498   :  { %4809 = vmatprep.subr.bf16.mxu0 %v4808_v46 }
 0x49a   :  { %4388 = vmatmul.mubr.msk.f32.vlgmr.msra.gmra.mrb[8].mxu0 %vm150_vm2, %v5461_v41  ;;  %v4828_v41 = vpack.c.bf16 %v1153_v58, %v1152_v57 }
 0x49b   :  { %4811 = vmatpush3.bf16.msra.mxu0 %v4808_v46  ;;  %4406 = vmatprep.mubr.msk.f32.mxu0 %vm741_vm4, %v998_v42 }
 0x49c   :  { %4813 = vmatprep.subr.bf16.mxu0 %v4812_v49 }
 0x49f   :  { %4815 = vmatpush3.bf16.msra.mxu0 %v4812_v49 }
 0x4a0   :  { %4817 = vmatprep.subr.bf16.mxu0 %v4816_v52 }
 0x4a3   :  { %4819 = vmatpush3.bf16.msra.mxu0 %v4816_v52  ;;  %v1441_v52 = vld [vmem:[#allocation2 + $0x4a0] ss:$0 sm:$0xff] }
 0x4a4   :  { %4821 = vmatprep.subr.bf16.mxu0 %v4820_v39 }
 0x4a7   :  { %4823 = vmatpush3.bf16.msra.mxu0 %v4820_v39 }
 0x4a8   :  { %4825 = vmatprep.subr.bf16.mxu0 %v4824_v40 }
 0x4aa   :  { %4407 = vmatmul.mubr.msk.f32.vlgmr.msra.gmra.mrb[10].mxu0 %vm741_vm4, %v999_v38 }
 0x4ab   :  { %4827 = vmatpush3.bf16.msra.mxu0 %v4824_v40 }
 0x4ac   :  { %4829 = vmatprep.subr.bf16.mxu0 %v4828_v41 }
 0x4af   :  { %4831 = vmatpush3.bf16.msra.mxu0 %v4828_v41 }
 0x4b0   :  { %4833 = vmatprep.subr.bf16.mxu0 %v4832_v62 }
 0x4b3   :  { %4835 = vmatpush3.bf16.msra.mxu0 %v4832_v62 }
 0x4b4   :  { %4837 = vmatprep.subr.bf16.mxu0 %v4836_v2 }
 0x4b7   :  { %4839 = vmatpush3.bf16.msra.mxu0 %v4836_v2  ;;  %v5529_v2 = vsub.s32 0, %v5526_v1 }
 0x4b8   :  { %4841 = vmatprep.subr.bf16.mxu0 %v4840_v5 }
 0x569   :  { %v4382_v8 = vpop.f32.mrb[6].mxu0 }
 0x56a   :  { %v1066_v9 = vpop.f32.mrb[7].mxu0 }
 0x56b   :  { %4425 = vmatprep.mubr.msk.f32.mxu0 %vm741_vm4, %v1066_v9 }
 0x56c   :  { %4426 = vmatmul.mubr.msk.f32.vlgmr.msra.gmra.mrb[10].mxu0 %vm741_vm4, %v4382_v8 }
 0x56d   :  { %4843 = vmatpush3.bf16.msra.mxu0 %v4840_v5  ;;  %v4389_v13 = vpop.f32.mrb[8].mxu0 }
 0x56e   :  { %4845 = vmatprep.subr.bf16.mxu0 %v4844_v10  ;;  %v1141_v15 = vpop.f32.mrb[9].mxu0 }
 0x56f   :  { %4444 = vmatprep.mubr.msk.f32.mxu0 %vm741_vm4, %v1141_v15  ;;  %v1682_v15 = vld [vmem:[#allocation2 + $0x70] sm:$0xff] }
 0x571   :  { %4847 = vmatpush3.bf16.msra.mxu0 %v4844_v10 }
 0x572   :  { %4849 = vmatprep.subr.bf16.mxu0 %v4848_v14 }
 0x575   :  { %4851 = vmatpush3.bf16.msra.mxu0 %v4848_v14  ;;  %v1608_v14 = vld [vmem:[#allocation2 + $0x60] sm:$0xff] }
 0x576   :  { %4853 = vmatprep.subr.bf16.mxu0 %v4852_v18 }
 0x579   :  { %4855 = vmatpush3.bf16.msra.mxu0 %v4852_v18  ;;  %v1760_v18 = vld [vmem:[#allocation2 + $0xae0] sm:$0xff] }
 0x57a   :  { %4466 = vmatprep.subr.mxu0 %v5399_v32 }
 0x57c   :  { %4445 = vmatmul.mubr.msk.f32.vlgmr.msra.gmra.mrb[10].mxu0 %vm741_vm4, %v4389_v13 }
 0x57d   :  { %4468 = vmatprep.mubr.msk.f32.mxu0 %vm5398_vm5, %v5399_v32  ;;  %4467 = vmatpush3.msra.mxu0 %v1516_v51  ;;  %v1998_v51 = vld [vmem:[#allocation2 + $0x5a0] sm:$0xff] }
 0x57e   :  { %4868 = vmatprep.subr.bf16.mxu0 %v5397_v22 }
 0x64f   :  { %v4446_v34 = vpop.f32.mrb[10].mxu0 }
 0x650   :  { %v1421_v35 = vadd.f32 %v4446_v34, %v1419_v33  ;;  %v1408_v36 = vpop.f32.mrb[11].mxu0  ;;  %v1993_v34 = vld [vmem:[#allocation2 + $0x550] sm:$0xff] }
 0x651   :  { %v1420_v37 = vadd.f32 %v1419_v33, %v1408_v36  ;;  %v5546_v33 = vld [vmem:[#allocation2 + $0x40] sm:$0xff]  ;;  %v4899_v36 = vpack.c.bf16 %v1986_v26, %v1985_v25  ;;  %v2376_v26 = vld [vmem:[#allocation2 + $0x6d0] sm:$0xff] }
 0x652   :  { %v1423_v38 = vsel %vm741_vm4, %v1421_v35, 0.0  ;;  %v2375_v25 = vld [vmem:[#allocation2 + $0x6c0] sm:$0xff] }
 0x653   :  { %v1422_v42 = vsel %vm741_vm4, %v1420_v37, 0.0 }
 0x654   :  { %v1424_v43 = vadd.f32 %v1423_v38, %v1422_v42  ;;  %v1988_v38 = vld [vmem:[#allocation2 + $0x500] sm:$0xff]  ;;  %v5554_v42 = vld [vmem:[#allocation2 + $0x50] sm:$0xff] }
 0x656   :  { %v1425_v44 = vrot.slane %v1424_v43, 4 }
 0x658   :  { %v1426_v45 = vadd.f32 %v1425_v44, %v1424_v43  ;;  %v1995_v44 = vld [vmem:[#allocation2 + $0x570] sm:$0xff] }
 0x65a   :  { %v1427_v46 = vrot.slane %v1426_v45, 2 }
 0x65c   :  { %v1428_v47 = vadd.f32 %v1427_v46, %v1426_v45  ;;  %v1996_v45 = vld [vmem:[#allocation2 + $0x580] sm:$0xff] }
 0x65e   :  { %v1429_v48 = vrot.slane %v1428_v47, 1 }
 0x660   :  { %v1430_v49 = vadd.f32 %v1429_v48, %v1428_v47  ;;  %v1989_v47 = vld [vmem:[#allocation2 + $0x510] sm:$0xff]  ;;  %v1990_v48 = vld [vmem:[#allocation2 + $0x520] sm:$0xff] }
 0x662   :  { %v1432_v50 = vmul.f32 0.0625, %v1430_v49  ;;  %v4890_v49 = vpack.c.bf16 %v1996_v45, %v1995_v44  ;;  %v2384_v44 = vld [vmem:[#allocation2 + $0x750] sm:$0xff] }
 0x664   :  { %4464 = vmatmul.mubr.msk.f32.vlgmr.msra.gmra.mrb[10].mxu1 %vm741_vm4, %v1432_v50  ;;  %v1997_v50 = vld [vmem:[#allocation2 + $0x590] sm:$0xff] }
 0x665   :  { %4482 = vmatprep.mubr.msk.f32.mxu1 %vm5398_vm5, %v5399_v32 }
 0x737   :  { %v1511_v53 = vpop.f32.mrb[10].mxu1 }
 0x738   :  { %v1512_v54 = vadd.f32 %v1511_v53, %v1441_v52  ;;  %v4465_v39 = vpop.f32.mrb[11].mxu1  ;;  %v4905_v52 = vpack.c.bf16 %v1990_v48, %v1989_v47  ;;  %v1991_v53 = vld [vmem:[#allocation2 + $0x530] sm:$0xff] }
 0x739   :  { %v4893_v39 = vpack.c.bf16 %v1998_v51, %v1997_v50  ;;  %v2226_v50 = vld [vmem:[#allocation2 + $0x650] ss:$0 sm:$0xff] }
 0x73a   :  { %v1515_v55 = vmax.f32 %v1512_v54, 0.0  ;;  %v1992_v54 = vld [vmem:[#allocation2 + $0x540] sm:$0xff] }
 0x73c   :  { %4469 = vmatmul.mubr.msk.f32.vlgmr.msra.gmra.mrb[12].mxu0 %vm1518_vm6, %v1515_v55  ;;  %v1999_v55 = vld [vmem:[#allocation2 + $0x5b0] sm:$0xff] }
 0x73d   :  { %4475 = vmatprep.mubr.msk.f32.mxu0 %vm5398_vm5, %v5399_v32 }
 0x80f   :  { %v1588_v40 = vpop.f32.mrb[12].mxu0 }
 0x810   :  { %v1589_v57 = vadd.f32 %v1588_v40, %v1517_v56  ;;  %v4470_v58 = vpop.f32.mrb[13].mxu0  ;;  %v2000_v56 = vld [vmem:[#allocation2 + $0x5c0] sm:$0xff]  ;;  %v4908_v40 = vpack.c.bf16 %v1992_v54, %v1991_v53 }
 0x811   :  { %v2144_v58 = vld [vmem:[#allocation2 + $0x5d0] sm:$0xff] }
 0x812   :  { %v1592_v41 = vsub.f32 0.0, %v1589_v57  ;;  %v4896_v57 = vpack.c.bf16 %v2000_v56, %v1999_v55  ;;  %v2386_v55 = vld [vmem:[#allocation2 + $0x770] sm:$0xff] }
 0x814   :  { %v1593_v59 = vmul.f32 1.442695, %v1592_v41  ;;  %v2145_v41 = vld [vmem:[#allocation2 + $0x5e0] sm:$0xff] }
 0x816   :  { %5335 = vpow2.f32 %v1593_v59  ;;  %v4911_v59 = vpack.c.bf16 %v2145_v41, %v2144_v58  ;;  %v2390_v41 = vld [vmem:[#allocation2 + $0x7b0] sm:$0xff] }
 0x820   :  { %v5336_v60 = vpop.eup %5335 }
 0x821   :  { %v1595_v62 = vadd.f32 1.0, %v5336_v60  ;;  %v2146_v60 = vld [vmem:[#allocation2 + $0x5f0] sm:$0xff] }
 0x823   :  { %5337 = vrcp.f32 %v1595_v62  ;;  %v2147_v62 = vld [vmem:[#allocation2 + $0x600] sm:$0xff] }
 0x824   :  { %v4914_v0 = vpack.c.bf16 %v2147_v62, %v2146_v60  ;;  %v2391_v60 = vld [vmem:[#allocation2 + $0x7c0] sm:$0xff]  ;;  %v2392_v62 = vld [vmem:[#allocation2 + $0x7d0] sm:$0xff] }
 0x82d   :  { %v5338_v3 = vpop.eup %5337 }
 0x82e   :  { %v1601_v4 = vrot.slane %v5338_v3, %v5529_v2  ;;  %v2148_v3 = vld [vmem:[#allocation2 + $0x610] sm:$0xff] }
 0x830   :  { %v1602_v5 = vmul.f32 %v1601_v4, %v1420_v37  ;;  %v1603_v6 = vmul.f32 %v1601_v4, %v1421_v35  ;;  %v1994_v35 = vld [vmem:[#allocation2 + $0x560] sm:$0xff]  ;;  %v1987_v37 = vld [vmem:[#allocation2 + $0x4f0] sm:$0xff] }
 0x831   :  { %v4887_v43 = vpack.c.bf16 %v1994_v35, %v1993_v34  ;;  %v4902_v46 = vpack.c.bf16 %v1988_v38, %v1987_v37  ;;  %v2149_v4 = vld [vmem:[#allocation2 + $0x620] sm:$0xff]  ;;  %v2380_v34 = vld [vmem:[#allocation2 + $0x710] sm:$0xff] }
 0x832   :  { %v1604_v7 = vadd.f32 %v1602_v5, %v5475_v63  ;;  %v1605_v8 = vadd.f32 %v1603_v6, %v5473_v61  ;;  %v4878_v61 = vpack.c.bf16 %v1760_v18, %v1759_v17  ;;  %v1761_v63 = vld [vmem:[#allocation2 + $0xaf0] sm:$0xff]  ;;  %v4917_v5 = vpack.c.bf16 %v2149_v4, %v2148_v3  ;;  %v2369_v17 = vld [vmem:[#allocation2 + $0x660] sm:$0xff] }
 0x833   :  { %v4881_v20 = vpack.c.bf16 %v1762_v19, %v1761_v63  ;;  %v2150_v6 = vld [vmem:[#allocation2 + $0x630] sm:$0xff] }
 0x834   :  { %v1606_v9 = vmax.f32 %v1604_v7, 0.0  ;;  %v1607_v10 = vmax.f32 %v1605_v8, 0.0  ;;  %v2151_v7 = vld [vmem:[#allocation2 + $0x640] sm:$0xff]  ;;  %v2370_v18 = vld [vmem:[#allocation2 + $0x670] sm:$0xff] }
 0x835   :  { %v4920_v8 = vpack.c.bf16 %v2151_v7, %v2150_v6  ;;  %v4947_v63 = vpack.c.bf16 %v2370_v18, %v2369_v17  ;;  %v2372_v19 = vld [vmem:[#allocation2 + $0x690] sm:$0xff]  ;;  %v2543_v18 = vld [vmem:[#allocation2 + $0x880] sm:$0xff] }
 0x836   :  { %v4869_v13 = vpack.c.bf16 %v1607_v10, %v1606_v9  ;;  %v2382_v37 = vld [vmem:[#allocation2 + $0x730] sm:$0xff] }
 0x837   :  { %v2394_v3 = vld [vmem:[#allocation2 + $0x7f0] sm:$0xff] }
 0x838   :  { %4870 = vmatpush3.bf16.msra.mxu0 %v4869_v13  ;;  %4873 = vmatpush3.bf16.msra.mxu1 %v4869_v13  ;;  %v2396_v6 = vld [vmem:[#allocation2 + $0x810] sm:$0xff] }
 0x839   :  { %4874 = vmatprep.subr.bf16.mxu0 %v5397_v22  ;;  %4504 = vmatprep.subr.mxu1 %v5399_v32 }
 0x83b   :  { %4476 = vmatmul.mubr.msk.f32.vlgmr.msra.gmra.mrb[14].mxu0 %vm150_vm2, %v1608_v14  ;;  %4483 = vmatmul.mubr.msk.f32.vlgmr.msra.gmra.mrb[12].mxu1 %vm150_vm2, %v1682_v15 }
 0x83c   :  { %4876 = vmatpush3.bf16.msra.mxu0 %v4875_v16  ;;  %4501 = vmatprep.mubr.msk.f32.mxu0 %vm5398_vm5, %v5399_v32 }
 0x83d   :  { %4877 = vmatprep.subr.bf16.mxu0 %v5397_v22  ;;  %4506 = vmatprep.mubr.msk.f32.mxu1 %vm5398_vm5, %v5399_v32 }
 0x840   :  { %4879 = vmatpush3.bf16.msra.mxu0 %v4878_v61  ;;  %v2371_v61 = vld [vmem:[#allocation2 + $0x680] sm:$0xff] }
 0x841   :  { %4880 = vmatprep.subr.bf16.mxu0 %v5397_v22 }
 0x844   :  { %4882 = vmatpush3.bf16.msra.mxu0 %v4881_v20  ;;  %v4950_v20 = vpack.c.bf16 %v2372_v19, %v2371_v61  ;;  %v2544_v61 = vld [vmem:[#allocation2 + $0x890] sm:$0xff]  ;;  %v2545_v19 = vld [vmem:[#allocation2 + $0x8a0] sm:$0xff] }
 0x845   :  { %4883 = vmatprep.subr.bf16.mxu0 %v5397_v22 }
 0x848   :  { %4885 = vmatpush3.bf16.msra.mxu0 %v4884_v24  ;;  %v4953_v24 = vpack.c.bf16 %v2374_v23, %v2373_v21  ;;  %v2547_v23 = vld [vmem:[#allocation2 + $0x8c0] sm:$0xff] }
 0x849   :  { %4898 = vmatprep.subr.bf16.mxu0 %v5397_v22 }
 0x90e   :  { %v1678_v27 = vpop.f32.mrb[14].mxu0  ;;  %v1752_v28 = vpop.f32.mrb[12].mxu1 }
 0x90f   :  { %v1756_v29 = vmax.f32 %v1678_v27, %v1752_v28  ;;  %v4477_v30 = vpop.f32.mrb[15].mxu0  ;;  %v4484_v31 = vpop.f32.mrb[13].mxu1  ;;  %v4956_v27 = vpack.c.bf16 %v2376_v26, %v2375_v25  ;;  %v2377_v28 = vld [vmem:[#allocation2 + $0x6e0] sm:$0xff] }
 0x910   :  { %v2379_v31 = vld [vmem:[#allocation2 + $0x700] sm:$0xff] }
 0x911   :  { %4502 = vmatmul.mubr.msk.f32.vlgmr.msra.gmra.mrb[16].mxu0 %vm741_vm4, %v1756_v29  ;;  %4505 = vmatpush3.msra.mxu1 %v1756_v29  ;;  %v4962_v35 = vpack.c.bf16 %v2380_v34, %v2379_v31  ;;  %v2549_v26 = vld [vmem:[#allocation2 + $0x8e0] sm:$0xff] }
 0x912   :  { %4507 = vmatmul.mubr.msk.f32.vlgmr.msra.gmra.mrb[14].mxu1 %vm1518_vm6, %v5546_v33  ;;  %4509 = vmatprep.subr.mxu1 %v5399_v32  ;;  %v2553_v34 = vld [vmem:[#allocation2 + $0x920] sm:$0xff] }
 0x913   :  { %4510 = vmatpush3.msra.mxu1 %v1756_v29  ;;  %4511 = vmatprep.mubr.msk.f32.mxu1 %vm5398_vm5, %v5399_v32 }
 0x914   :  { %4886 = vmatprep.subr.bf16.mxu1 %v5397_v22  ;;  %4900 = vmatpush3.bf16.msra.mxu0 %v4899_v36  ;;  %v2381_v36 = vld [vmem:[#allocation2 + $0x720] sm:$0xff] }
 0x915   :  { %4901 = vmatprep.subr.bf16.mxu0 %v5397_v22  ;;  %4549 = vmatprep.mubr.msk.f32.mxu0 %vm5398_vm5, %v5399_v32  ;;  %v4965_v38 = vpack.c.bf16 %v2382_v37, %v2381_v36  ;;  %v2555_v37 = vld [vmem:[#allocation2 + $0x940] sm:$0xff] }
 0x916   :  { %4512 = vmatmul.mubr.msk.f32.vlgmr.msra.gmra.mrb[16].mxu1 %vm1518_vm6, %v5554_v42 }
 0x917   :  { %4888 = vmatpush3.bf16.msra.mxu1 %v4887_v43  ;;  %4530 = vmatprep.mubr.msk.f32.mxu1 %vm5398_vm5, %v5399_v32  ;;  %v2383_v43 = vld [vmem:[#allocation2 + $0x740] sm:$0xff] }
 0x918   :  { %4889 = vmatprep.subr.bf16.mxu1 %v5397_v22  ;;  %4903 = vmatpush3.bf16.msra.mxu0 %v4902_v46  ;;  %v4968_v45 = vpack.c.bf16 %v2384_v44, %v2383_v43  ;;  %v2638_v44 = vld [vmem:[#allocation2 + $0x970] sm:$0xff] }
 0x919   :  { %4904 = vmatprep.subr.bf16.mxu0 %v5397_v22 }
 0x91b   :  { %4891 = vmatpush3.bf16.msra.mxu1 %v4890_v49 }
 0x91c   :  { %4892 = vmatprep.subr.bf16.mxu1 %v5397_v22  ;;  %4906 = vmatpush3.bf16.msra.mxu0 %v4905_v52 }
 0x91d   :  { %4907 = vmatprep.subr.bf16.mxu0 %v5397_v22 }
 0x91f   :  { %4894 = vmatpush3.bf16.msra.mxu1 %v4893_v39  ;;  %v2385_v39 = vld [vmem:[#allocation2 + $0x760] sm:$0xff] }
 0x920   :  { %4895 = vmatprep.subr.bf16.mxu1 %v5397_v22  ;;  %4909 = vmatpush3.bf16.msra.mxu0 %v4908_v40  ;;  %v4923_v56 = vpack.c.bf16 %v2386_v55, %v2385_v39  ;;  %v2387_v40 = vld [vmem:[#allocation2 + $0x780] sm:$0xff]  ;;  %v2642_v55 = vld [vmem:[#allocation2 + $0x9b0] sm:$0xff] }
 0x921   :  { %4571 = vmatprep.subr.mxu0 %v5399_v32 }
 0x923   :  { %4897 = vmatpush3.bf16.msra.mxu1 %v4896_v57  ;;  %v2388_v57 = vld [vmem:[#allocation2 + $0x790] sm:$0xff] }
 0x924   :  { %4910 = vmatprep.subr.bf16.mxu1 %v5397_v22  ;;  %v4926_v58 = vpack.c.bf16 %v2388_v57, %v2387_v40  ;;  %v2644_v57 = vld [vmem:[#allocation2 + $0x9d0] sm:$0xff] }
 0x926   :  { %4531 = vmatmul.mubr.msk.f32.vlgmr.msra.gmra.mrb[18].mxu1 %vm741_vm4, %v1756_v29  ;;  %v2378_v29 = vld [vmem:[#allocation2 + $0x6f0] sm:$0xff] }
 0x927   :  { %4912 = vmatpush3.bf16.msra.mxu1 %v4911_v59  ;;  %4568 = vmatprep.mubr.msk.f32.mxu1 %vm5398_vm5, %v5399_v32  ;;  %v4959_v30 = vpack.c.bf16 %v2378_v29, %v2377_v28  ;;  %v2551_v29 = vld [vmem:[#allocation2 + $0x900] sm:$0xff] }
 0x928   :  { %4913 = vmatprep.subr.bf16.mxu1 %v5397_v22 }
 0x92b   :  { %4915 = vmatpush3.bf16.msra.mxu1 %v4914_v0  ;;  %v4932_v0 = vpack.c.bf16 %v2392_v62, %v2391_v60  ;;  %v2648_v62 = vld [vmem:[#allocation2 + $0xa10] sm:$0xff] }
 0x92c   :  { %4916 = vmatprep.subr.bf16.mxu1 %v5397_v22 }
 0x92f   :  { %4918 = vmatpush3.bf16.msra.mxu1 %v4917_v5  ;;  %v2395_v5 = vld [vmem:[#allocation2 + $0x800] sm:$0xff] }
 0x930   :  { %4919 = vmatprep.subr.bf16.mxu1 %v5397_v22  ;;  %v4938_v7 = vpack.c.bf16 %v2396_v6, %v2395_v5  ;;  %v2652_v6 = vld [vmem:[#allocation2 + $0xa50] sm:$0xff] }
 0x933   :  { %4921 = vmatpush3.bf16.msra.mxu1 %v4920_v8  ;;  %v2397_v8 = vld [vmem:[#allocation2 + $0x820] sm:$0xff] }
 0x934   :  { %4946 = vmatprep.subr.bf16.mxu1 %v5397_v22 }
 0x9e4   :  { %v5578_v9 = vpop.f32.mrb[16].mxu0 }
 0x9e5   :  { %v4503_v10 = vpop.f32.mrb[17].mxu0  ;;  %v1908_v11 = vpop.f32.mrb[14].mxu1 }
 0x9e6   :  { %v4508_v12 = vpop.f32.mrb[15].mxu1  ;;  %4550 = vmatmul.mubr.msk.f32.vlgmr.msra.gmra.mrb[18].mxu0 %vm741_vm4, %v1908_v11  ;;  %v2398_v10 = vld [vmem:[#allocation2 + $0x830] sm:$0xff] }
 0x9e7   :  { %4573 = vmatprep.mubr.msk.f32.mxu0 %vm5398_vm5, %v5399_v32  ;;  %v4941_v11 = vpack.c.bf16 %v2398_v10, %v2397_v8  ;;  %v2399_v12 = vld [vmem:[#allocation2 + $0x840] sm:$0xff] }
 0x9e9   :  { %v1981_v13 = vpop.f32.mrb[16].mxu1 }
 0x9ea   :  { %v4513_v14 = vpop.f32.mrb[17].mxu1  ;;  %4569 = vmatmul.mubr.msk.f32.vlgmr.msra.gmra.mrb[20].mxu1 %vm741_vm4, %v1981_v13  ;;  %v2400_v13 = vld [vmem:[#allocation2 + $0x850] sm:$0xff] }
 0x9eb   :  { %4648 = vmatprep.mubr.msk.f32.mxu1 %vm5398_vm5, %v5399_v32  ;;  %4948 = vmatpush3.bf16.msra.mxu1 %v4947_v63  ;;  %v4944_v14 = vpack.c.bf16 %v2400_v13, %v2399_v12  ;;  %v4974_v63 = vpack.c.bf16 %v2544_v61, %v2543_v18 }
 0x9ec   :  { %4949 = vmatprep.subr.bf16.mxu1 %v5397_v22 }
 0x9ef   :  { %4951 = vmatpush3.bf16.msra.mxu1 %v4950_v20  ;;  %v2546_v20 = vld [vmem:[#allocation2 + $0x8b0] sm:$0xff] }
 0x9f0   :  { %4952 = vmatprep.subr.bf16.mxu1 %v5397_v22  ;;  %v4977_v21 = vpack.c.bf16 %v2546_v20, %v2545_v19 }
 0x9f3   :  { %4954 = vmatpush3.bf16.msra.mxu1 %v4953_v24  ;;  %v2548_v24 = vld [vmem:[#allocation2 + $0x8d0] sm:$0xff] }
 0x9f4   :  { %4955 = vmatprep.subr.bf16.mxu1 %v5397_v22  ;;  %v4980_v25 = vpack.c.bf16 %v2548_v24, %v2547_v23  ;;  %v2727_v24 = vld [vmem:[#allocation2 + $0xa90] sm:$0xff] }
 0x9f7   :  { %4957 = vmatpush3.bf16.msra.mxu1 %v4956_v27  ;;  %v2550_v27 = vld [vmem:[#allocation2 + $0x8f0] sm:$0xff] }
 0x9f8   :  { %4958 = vmatprep.subr.bf16.mxu1 %v5397_v22  ;;  %v4983_v28 = vpack.c.bf16 %v2550_v27, %v2549_v26  ;;  %v2654_v26 = vld [vmem:[#allocation2 + $0xa70] ss:$0 sm:$0xff] }
 0x9f9   :  { %v2067_v15 = vpop.f32.mrb[18].mxu1 }
 0x9fa   :  { %v4532_v16 = vpop.f32.mrb[19].mxu1 }
 0x9fb   :  { %4960 = vmatpush3.bf16.msra.mxu1 %v4959_v30  ;;  %v2542_v16 = vld [vmem:[#allocation2 + $0x870] sm:$0xff] }
 0x9fc   :  { %4961 = vmatprep.subr.bf16.mxu1 %v5397_v22  ;;  %v2552_v30 = vld [vmem:[#allocation2 + $0x910] sm:$0xff] }
 0x9fd   :  { %v4986_v31 = vpack.c.bf16 %v2552_v30, %v2551_v29 }
 0x9ff   :  { %4963 = vmatpush3.bf16.msra.mxu1 %v4962_v35  ;;  %v2554_v35 = vld [vmem:[#allocation2 + $0x930] sm:$0xff] }
 0xa00   :  { %4964 = vmatprep.subr.bf16.mxu1 %v5397_v22  ;;  %v4989_v36 = vpack.c.bf16 %v2554_v35, %v2553_v34  ;;  %v2820_v34 = vld [vmem:[#allocation2 + $0xb58] sm:$0xff] }
 0xa03   :  { %4966 = vmatpush3.bf16.msra.mxu1 %v4965_v38  ;;  %v2556_v38 = vld [vmem:[#allocation2 + $0x950] sm:$0xff] }
 0xa04   :  { %4967 = vmatprep.subr.bf16.mxu1 %v5397_v22  ;;  %v4992_v43 = vpack.c.bf16 %v2556_v38, %v2555_v37  ;;  %v2819_v37 = vld [vmem:[#allocation2 + $0xb50] sm:$0xff] }
 0xa07   :  { %4969 = vmatpush3.bf16.msra.mxu1 %v4968_v45  ;;  %v2639_v45 = vld [vmem:[#allocation2 + $0x980] sm:$0xff] }
 0xa08   :  { %4994 = vmatprep.subr.bf16.mxu1 %v5397_v22 }
 0xab9   :  { %v2140_v46 = vpop.f32.mrb[18].mxu0 }
 0xaba   :  { %v2141_v47 = vadd.f32 %v2140_v46, %v2067_v15  ;;  %v4551_v48 = vpop.f32.mrb[19].mxu0  ;;  %v2541_v15 = vld [vmem:[#allocation2 + $0x860] sm:$0xff]  ;;  %v4995_v46 = vpack.c.bf16 %v2639_v45, %v2638_v44  ;;  %v2942_v44 = vld [vmem:[#allocation2 + $0xc58] sm:$0xff] }
 0xabb   :  { %v4971_v17 = vpack.c.bf16 %v2542_v16, %v2541_v15  ;;  %v2641_v48 = vld [vmem:[#allocation2 + $0x9a0] sm:$0xff] }
 0xabd   :  { %v2221_v49 = vpop.f32.mrb[20].mxu1 }
 0xabe   :  { %v2225_v51 = vadd.f32 %v2221_v49, %v2141_v47  ;;  %v4570_v52 = vpop.f32.mrb[21].mxu1  ;;  %v2640_v47 = vld [vmem:[#allocation2 + $0x990] sm:$0xff] }
 0xac0   :  { %v2227_v53 = vadd.f32 %v2226_v50, %v2225_v51  ;;  %v4998_v51 = vpack.c.bf16 %v2641_v48, %v2640_v47  ;;  %v2941_v47 = vld [vmem:[#allocation2 + $0xc50] sm:$0xff] }
 0xac2   :  { %v2228_v54 = vmax.f32 %v2227_v53, 0.0 }
 0xac4   :  { %4572 = vmatpush3.msra.mxu0 %v2228_v54 }
 0xac5   :  { %4574 = vmatmul.mubr.msk.f32.vlgmr.msra.gmra.mrb[20].mxu0 %vm1518_vm6, %v5546_v33  ;;  %4576 = vmatprep.subr.mxu0 %v5399_v32  ;;  %v2389_v33 = vld [vmem:[#allocation2 + $0x7a0] sm:$0xff] }
 0xac6   :  { %4577 = vmatpush3.msra.mxu0 %v2228_v54  ;;  %4578 = vmatprep.mubr.msk.f32.mxu0 %vm5398_vm5, %v5399_v32  ;;  %v4929_v59 = vpack.c.bf16 %v2390_v41, %v2389_v33  ;;  %v2646_v41 = vld [vmem:[#allocation2 + $0x9f0] sm:$0xff] }
 0xac7   :  { %4922 = vmatprep.subr.bf16.mxu0 %v5397_v22 }
 0xac9   :  { %4579 = vmatmul.mubr.msk.f32.vlgmr.msra.gmra.mrb[22].mxu0 %vm1518_vm6, %v5554_v42  ;;  %v2393_v42 = vld [vmem:[#allocation2 + $0x7e0] sm:$0xff] }
 0xaca   :  { %4924 = vmatpush3.bf16.msra.mxu0 %v4923_v56  ;;  %4613 = vmatprep.mubr.msk.f32.mxu0 %vm5398_vm5, %v5399_v32  ;;  %v4935_v4 = vpack.c.bf16 %v2394_v3, %v2393_v42  ;;  %v2643_v56 = vld [vmem:[#allocation2 + $0x9c0] sm:$0xff]  ;;  %v2650_v3 = vld [vmem:[#allocation2 + $0xa30] sm:$0xff] }
 0xacb   :  { %4925 = vmatprep.subr.bf16.mxu0 %v5397_v22  ;;  %v5001_v40 = vpack.c.bf16 %v2643_v56, %v2642_v55  ;;  %v2946_v55 = vld [vmem:[#allocation2 + $0xc78] sm:$0xff] }
 0xace   :  { %4927 = vmatpush3.bf16.msra.mxu0 %v4926_v58  ;;  %v2645_v58 = vld [vmem:[#allocation2 + $0x9e0] sm:$0xff] }
 0xacf   :  { %4928 = vmatprep.subr.bf16.mxu0 %v5397_v22  ;;  %v5004_v33 = vpack.c.bf16 %v2645_v58, %v2644_v57  ;;  %v2945_v57 = vld [vmem:[#allocation2 + $0xc70] sm:$0xff] }
 0xad2   :  { %4930 = vmatpush3.bf16.msra.mxu0 %v4929_v59  ;;  %v2647_v59 = vld [vmem:[#allocation2 + $0xa00] sm:$0xff] }
 0xad3   :  { %4931 = vmatprep.subr.bf16.mxu0 %v5397_v22  ;;  %v5007_v60 = vpack.c.bf16 %v2647_v59, %v2646_v41  ;;  %v2828_v41 = vld [vmem:[#allocation2 + $0xb98] sm:$0xff] }
 0xad6   :  { %4933 = vmatpush3.bf16.msra.mxu0 %v4932_v0  ;;  %v2649_v0 = vld [vmem:[#allocation2 + $0xa20] sm:$0xff] }
 0xad7   :  { %4934 = vmatprep.subr.bf16.mxu0 %v5397_v22  ;;  %v5010_v42 = vpack.c.bf16 %v2649_v0, %v2648_v62  ;;  %v2827_v62 = vld [vmem:[#allocation2 + $0xb90] sm:$0xff] }
 0xada   :  { %4936 = vmatpush3.bf16.msra.mxu0 %v4935_v4  ;;  %v2651_v4 = vld [vmem:[#allocation2 + $0xa40] sm:$0xff] }
 0xadb   :  { %4937 = vmatprep.subr.bf16.mxu0 %v5397_v22  ;;  %v5013_v5 = vpack.c.bf16 %v2651_v4, %v2650_v3  ;;  %v2950_v3 = vld [vmem:[#allocation2 + $0xc98] sm:$0xff] }
 0xade   :  { %4939 = vmatpush3.bf16.msra.mxu0 %v4938_v7  ;;  %v2653_v7 = vld [vmem:[#allocation2 + $0xa60] sm:$0xff] }
 0xadf   :  { %4940 = vmatprep.subr.bf16.mxu0 %v5397_v22  ;;  %v5016_v8 = vpack.c.bf16 %v2653_v7, %v2652_v6  ;;  %v2949_v6 = vld [vmem:[#allocation2 + $0xc90] sm:$0xff] }
 0xae2   :  { %4942 = vmatpush3.bf16.msra.mxu0 %v4941_v11 }
 0xae3   :  { %4943 = vmatprep.subr.bf16.mxu0 %v5397_v22 }
 0xae6   :  { %4945 = vmatpush3.bf16.msra.mxu0 %v4944_v14  ;;  %v2628_v14 = vld [vmem:[#allocation2 + $0x960] ss:$0 sm:$0xff] }
 0xae7   :  { %4970 = vmatprep.subr.bf16.mxu0 %v5397_v22 }
 0xae9   :  { %4614 = vmatmul.mubr.f32.vlgmr.msra.gmra.mrb[24].mxu0 %v2228_v54 }
 0xaea   :  { %4972 = vmatpush3.bf16.msra.mxu0 %v4971_v17  ;;  %4683 = vmatprep.mubr.msk.f32.mxu0 %vm5398_vm5, %v5399_v32 }
 0xaeb   :  { %4973 = vmatprep.subr.bf16.mxu0 %v5397_v22 }
 0xaee   :  { %4975 = vmatpush3.bf16.msra.mxu0 %v4974_v63 }
 0xaef   :  { %4976 = vmatprep.subr.bf16.mxu0 %v5397_v22 }
 0xaf2   :  { %4978 = vmatpush3.bf16.msra.mxu0 %v4977_v21 }
 0xaf3   :  { %4979 = vmatprep.subr.bf16.mxu0 %v5397_v22 }
 0xaf6   :  { %4981 = vmatpush3.bf16.msra.mxu0 %v4980_v25 }
 0xaf7   :  { %4982 = vmatprep.subr.bf16.mxu0 %v5397_v22 }
 0xafa   :  { %4984 = vmatpush3.bf16.msra.mxu0 %v4983_v28 }
 0xafb   :  { %4985 = vmatprep.subr.bf16.mxu0 %v5397_v22 }
 0xafe   :  { %4987 = vmatpush3.bf16.msra.mxu0 %v4986_v31  ;;  %v2818_v31 = vld [vmem:[#allocation2 + $0xb48] sm:$0xff] }
 0xaff   :  { %4988 = vmatprep.subr.bf16.mxu0 %v5397_v22  ;;  %v5021_v35 = vpack.c.bf16 %v2820_v34, %v2818_v31  ;;  %v2838_v34 = vld [vmem:[#allocation2 + $0xbe8] sm:$0xff] }
 0xb02   :  { %4990 = vmatpush3.bf16.msra.mxu0 %v4989_v36  ;;  %v2817_v36 = vld [vmem:[#allocation2 + $0xb40] sm:$0xff] }
 0xb03   :  { %4991 = vmatprep.subr.bf16.mxu0 %v5397_v22  ;;  %v5023_v38 = vpack.c.bf16 %v2819_v37, %v2817_v36  ;;  %v2837_v37 = vld [vmem:[#allocation2 + $0xbe0] sm:$0xff] }
 0xb06   :  { %4993 = vmatpush3.bf16.msra.mxu0 %v4992_v43  ;;  %v2940_v43 = vld [vmem:[#allocation2 + $0xc48] sm:$0xff] }
 0xb07   :  { %5018 = vmatprep.subr.bf16.mxu0 %v5397_v22  ;;  %v5053_v45 = vpack.c.bf16 %v2942_v44, %v2940_v43  ;;  %v2960_v44 = vld [vmem:[#allocation2 + $0xce8] sm:$0xff] }
 0xb98   :  { %v2295_v49 = vpop.f32.mrb[20].mxu0 }
 0xb99   :  { %4649 = vmatmul.mubr.f32.vlgmr.msra.gmra.mrb[22].mxu1 %v2295_v49  ;;  %v4575_v50 = vpop.f32.mrb[21].mxu0  ;;  %v2822_v49 = vld [vmem:[#allocation2 + $0xb68] sm:$0xff] }
 0xb9a   :  { %4996 = vmatpush3.bf16.msra.mxu1 %v4995_v46  ;;  %4718 = vmatprep.mubr.msk.f32.mxu1 %vm5398_vm5, %v5399_v32  ;;  %v2939_v46 = vld [vmem:[#allocation2 + $0xc40] sm:$0xff]  ;;  %v2824_v50 = vld [vmem:[#allocation2 + $0xb78] sm:$0xff] }
 0xb9b   :  { %4997 = vmatprep.subr.bf16.mxu1 %v5397_v22  ;;  %v5055_v48 = vpack.c.bf16 %v2941_v47, %v2939_v46  ;;  %v2959_v47 = vld [vmem:[#allocation2 + $0xce0] sm:$0xff] }
 0xb9c   :  { %v2365_v52 = vpop.f32.mrb[22].mxu0 }
 0xb9d   :  { %4684 = vmatmul.mubr.f32.vlgmr.msra.gmra.mrb[26].mxu0 %v2365_v52  ;;  %v4580_v53 = vpop.f32.mrb[23].mxu0  ;;  %v2821_v52 = vld [vmem:[#allocation2 + $0xb60] sm:$0xff] }
 0xb9e   :  { %4999 = vmatpush3.bf16.msra.mxu1 %v4998_v51  ;;  %4725 = vmatprep.mubr.msk.f32.mxu0 %vm5398_vm5, %v5399_v32  ;;  %v5025_v51 = vpack.c.bf16 %v2824_v50, %v2822_v49  ;;  %v2823_v53 = vld [vmem:[#allocation2 + $0xb70] sm:$0xff]  ;;  %v2842_v50 = vld [vmem:[#allocation2 + $0xc08] sm:$0xff] }
 0xb9f   :  { %5000 = vmatprep.subr.bf16.mxu1 %v5397_v22 }
 0xba2   :  { %5002 = vmatpush3.bf16.msra.mxu1 %v5001_v40  ;;  %v2943_v40 = vld [vmem:[#allocation2 + $0xc60] sm:$0xff] }
 0xba3   :  { %5003 = vmatprep.subr.bf16.mxu1 %v5397_v22  ;;  %v5059_v58 = vpack.c.bf16 %v2945_v57, %v2943_v40  ;;  %v2963_v57 = vld [vmem:[#allocation2 + $0xd00] sm:$0xff] }
 0xba6   :  { %5005 = vmatpush3.bf16.msra.mxu1 %v5004_v33  ;;  %v2826_v33 = vld [vmem:[#allocation2 + $0xb88] sm:$0xff] }
 0xba7   :  { %5006 = vmatprep.subr.bf16.mxu1 %v5397_v22  ;;  %v5029_v59 = vpack.c.bf16 %v2828_v41, %v2826_v33  ;;  %v2846_v41 = vld [vmem:[#allocation2 + $0xc28] sm:$0xff] }
 0xbaa   :  { %5008 = vmatpush3.bf16.msra.mxu1 %v5007_v60  ;;  %v2825_v60 = vld [vmem:[#allocation2 + $0xb80] sm:$0xff] }
 0xbab   :  { %5009 = vmatprep.subr.bf16.mxu1 %v5397_v22  ;;  %v5031_v0 = vpack.c.bf16 %v2827_v62, %v2825_v60  ;;  %v2845_v62 = vld [vmem:[#allocation2 + $0xc20] sm:$0xff] }
 0xbae   :  { %5011 = vmatpush3.bf16.msra.mxu1 %v5010_v42  ;;  %v2948_v42 = vld [vmem:[#allocation2 + $0xc88] sm:$0xff] }
 0xbaf   :  { %5012 = vmatprep.subr.bf16.mxu1 %v5397_v22  ;;  %v5061_v4 = vpack.c.bf16 %v2950_v3, %v2948_v42  ;;  %v2968_v3 = vld [vmem:[#allocation2 + $0xd28] sm:$0xff] }
 0xbb2   :  { %5014 = vmatpush3.bf16.msra.mxu1 %v5013_v5  ;;  %v2947_v5 = vld [vmem:[#allocation2 + $0xc80] sm:$0xff] }
 0xbb3   :  { %5015 = vmatprep.subr.bf16.mxu1 %v5397_v22  ;;  %v2726_v22 = vld [vmem:[#allocation2 + $0xa80] sm:$0xff]  ;;  %v5063_v7 = vpack.c.bf16 %v2949_v6, %v2947_v5 }
 0xbb4   :  { %v5019_v25 = vpack.c.bf16 %v2727_v24, %v2726_v22  ;;  %v2833_v22 = vld [vmem:[#allocation2 + $0xbc0] sm:$0xff]  ;;  %v2835_v24 = vld [vmem:[#allocation2 + $0xbd0] sm:$0xff] }
 0xbb5   :  { %v2967_v6 = vld [vmem:[#allocation2 + $0xd20] sm:$0xff] }
 0xbb6   :  { %5017 = vmatpush3.bf16.msra.mxu1 %v5016_v8  ;;  %5020 = vmatpush3.bf16.msra.mxu0 %v5019_v25  ;;  %v2830_v8 = vld [vmem:[#allocation2 + $0xba8] sm:$0xff]  ;;  %v5039_v25 = vpack.c.bf16 %v2835_v24, %v2833_v22  ;;  %v1765_v24 = vld [vmem:[#allocation2 + $0xb30] ss:$0 sm:$0xff] }
 0xbb7   :  { %5022 = vmatprep.subr.bf16.mxu1 %v5021_v35  ;;  %5054 = vmatprep.subr.bf16.mxu0 %v5053_v45  ;;  %v2840_v35 = vld [vmem:[#allocation2 + $0xbf8] sm:$0xff] }
 0xbb8   :  { %v5041_v36 = vpack.c.bf16 %v2840_v35, %v2838_v34  ;;  %v2962_v45 = vld [vmem:[#allocation2 + $0xcf8] sm:$0xff]  ;;  %v3188_v35 = vld [vmem:[#allocation2 + $0xe40] sm:$0xff] }
 0xbb9   :  { %v5073_v46 = vpack.c.bf16 %v2962_v45, %v2960_v44 }
 0xbbc   :  { %v2467_v54 = vpop.f32.mrb[24].mxu0 }
 0xbbd   :  { %v4615_v39 = vpop.f32.mrb[25].mxu0 }
 0xbbe   :  { %v2944_v39 = vld [vmem:[#allocation2 + $0xc68] sm:$0xff] }
 0xbbf   :  { %v5057_v56 = vpack.c.bf16 %v2946_v55, %v2944_v39  ;;  %v2964_v55 = vld [vmem:[#allocation2 + $0xd08] sm:$0xff] }
 0xc6c   :  { %v2537_v10 = vpop.f32.mrb[22].mxu1 }
 0xc6d   :  { %v2538_v11 = vadd.f32 %v2537_v10, %v2467_v54  ;;  %v4650_v12 = vpop.f32.mrb[23].mxu1  ;;  %v5027_v54 = vpack.c.bf16 %v2823_v53, %v2821_v52  ;;  %v2832_v10 = vld [vmem:[#allocation2 + $0xbb8] sm:$0xff]  ;;  %v2841_v53 = vld [vmem:[#allocation2 + $0xc00] sm:$0xff] }
 0xc6e   :  { %v2829_v12 = vld [vmem:[#allocation2 + $0xba0] sm:$0xff] }
 0xc70   :  { %v2623_v13 = vpop.f32.mrb[26].mxu0 }
 0xc71   :  { %v2627_v15 = vadd.f32 %v2623_v13, %v2538_v11  ;;  %v4685_v16 = vpop.f32.mrb[27].mxu0  ;;  %v5033_v11 = vpack.c.bf16 %v2832_v10, %v2830_v8  ;;  %v2831_v13 = vld [vmem:[#allocation2 + $0xbb0] sm:$0xff]  ;;  %v3065_v10 = vld [vmem:[#allocation2 + $0xd48] sm:$0xff] }
 0xc72   :  { %v2954_v16 = vld [vmem:[#allocation2 + $0xcb8] sm:$0xff] }
 0xc73   :  { %v5633_v17 = vadd.f32 %v2628_v14, %v2627_v15  ;;  %v5035_v14 = vpack.c.bf16 %v2831_v13, %v2829_v12  ;;  %v2952_v15 = vld [vmem:[#allocation2 + $0xca8] sm:$0xff] }
 0xc74   :  { %v3189_v13 = vld [vmem:[#allocation2 + $0xe48] sm:$0xff] }
 0xc75   :  { %v2630_v18 = vrot.slane %v5633_v17, 4 }
 0xc77   :  { %v2631_v61 = vadd.f32 %v2630_v18, %v5633_v17  ;;  %v5065_v18 = vpack.c.bf16 %v2954_v16, %v2952_v15  ;;  %v2728_v16 = vld [vmem:[#allocation2 + $0xaa0] ss:$0 sm:$0xff] }
 0xc79   :  { %v2632_v63 = vrot.slane %v2631_v61, 2 }
 0xc7b   :  { %v2633_v19 = vadd.f32 %v2632_v63, %v2631_v61  ;;  %v2951_v61 = vld [vmem:[#allocation2 + $0xca0] sm:$0xff]  ;;  %v2953_v63 = vld [vmem:[#allocation2 + $0xcb0] sm:$0xff] }
 0xc7d   :  { %v2634_v20 = vrot.slane %v2633_v19, 1 }
 0xc7f   :  { %v2635_v21 = vadd.f32 %v2634_v20, %v2633_v19  ;;  %v5067_v19 = vpack.c.bf16 %v2953_v63, %v2951_v61  ;;  %v2834_v20 = vld [vmem:[#allocation2 + $0xbc8] sm:$0xff] }
 0xc81   :  { %v2637_v23 = vmul.f32 0.125, %v2635_v21  ;;  %v2836_v21 = vld [vmem:[#allocation2 + $0xbd8] sm:$0xff] }
 0xc83   :  { %4719 = vmatmul.mubr.f32.vlgmr.msra.gmra.mrb[24].mxu1 %v2637_v23  ;;  %v5037_v23 = vpack.c.bf16 %v2836_v21, %v2834_v20 }
 0xc84   :  { %2913 = vmatprep.mubr.f32.mxu1 %v5399_v32  ;;  %5024 = vmatpush1.bf16.msra.mxu1 %v5023_v38  ;;  %v2839_v38 = vld [vmem:[#allocation2 + $0xbf0] sm:$0xff] }
 0xc85   :  { %5026 = vmatprep.subr.bf16.mxu1 %v5025_v51  ;;  %v5043_v43 = vpack.c.bf16 %v2839_v38, %v2837_v37  ;;  %v2844_v51 = vld [vmem:[#allocation2 + $0xc18] sm:$0xff]  ;;  %v3193_v38 = vld [vmem:[#allocation2 + $0xe68] sm:$0xff] }
 0xc86   :  { %v5045_v52 = vpack.c.bf16 %v2844_v51, %v2842_v50  ;;  %v3192_v51 = vld [vmem:[#allocation2 + $0xe60] sm:$0xff] }
 0xc88   :  { %5028 = vmatpush1.bf16.msra.mxu1 %v5027_v54  ;;  %v2843_v54 = vld [vmem:[#allocation2 + $0xc10] sm:$0xff] }
 0xc89   :  { %5030 = vmatprep.subr.bf16.mxu1 %v5029_v59  ;;  %v5047_v39 = vpack.c.bf16 %v2843_v54, %v2841_v53  ;;  %v2848_v59 = vld [vmem:[#allocation2 + $0xc38] sm:$0xff]  ;;  %v3197_v54 = vld [vmem:[#allocation2 + $0xe88] sm:$0xff] }
 0xc8a   :  { %v5049_v60 = vpack.c.bf16 %v2848_v59, %v2846_v41  ;;  %v3196_v59 = vld [vmem:[#allocation2 + $0xe80] sm:$0xff] }
 0xc8c   :  { %5032 = vmatpush1.bf16.msra.mxu1 %v5031_v0  ;;  %v2847_v0 = vld [vmem:[#allocation2 + $0xc30] sm:$0xff] }
 0xc8d   :  { %5034 = vmatprep.subr.bf16.mxu1 %v5033_v11  ;;  %v5051_v42 = vpack.c.bf16 %v2847_v0, %v2845_v62  ;;  %v3067_v11 = vld [vmem:[#allocation2 + $0xd58] sm:$0xff]  ;;  %v3201_v0 = vld [vmem:[#allocation2 + $0xea8] sm:$0xff] }
 0xc8e   :  { %v5085_v12 = vpack.c.bf16 %v3067_v11, %v3065_v10  ;;  %v3200_v11 = vld [vmem:[#allocation2 + $0xea0] sm:$0xff] }
 0xc90   :  { %5036 = vmatpush1.bf16.msra.mxu1 %v5035_v14  ;;  %v3191_v14 = vld [vmem:[#allocation2 + $0xe58] sm:$0xff] }
 0xc91   :  { %5038 = vmatprep.subr.bf16.mxu1 %v5037_v23  ;;  %v5117_v15 = vpack.c.bf16 %v3191_v14, %v3189_v13  ;;  %v3205_v14 = vld [vmem:[#allocation2 + $0xec8] sm:$0xff] }
 0xc94   :  { %5040 = vmatpush1.bf16.msra.mxu1 %v5039_v25 }
 0xc95   :  { %5042 = vmatprep.subr.bf16.mxu1 %v5041_v36  ;;  %v3190_v36 = vld [vmem:[#allocation2 + $0xe50] sm:$0xff] }
 0xc98   :  { %5044 = vmatpush1.bf16.msra.mxu1 %v5043_v43  ;;  %v3195_v43 = vld [vmem:[#allocation2 + $0xe78] sm:$0xff] }
 0xc99   :  { %5046 = vmatprep.subr.bf16.mxu1 %v5045_v52  ;;  %v5121_v50 = vpack.c.bf16 %v3195_v43, %v3193_v38  ;;  %v3194_v52 = vld [vmem:[#allocation2 + $0xe70] sm:$0xff]  ;;  %v3213_v43 = vld [vmem:[#allocation2 + $0xf08] sm:$0xff] }
 0xc9c   :  { %5048 = vmatpush1.bf16.msra.mxu1 %v5047_v39  ;;  %v3199_v39 = vld [vmem:[#allocation2 + $0xe98] sm:$0xff] }
 0xc9d   :  { %5050 = vmatprep.subr.bf16.mxu1 %v5049_v60  ;;  %v5125_v41 = vpack.c.bf16 %v3199_v39, %v3197_v54  ;;  %v3198_v60 = vld [vmem:[#allocation2 + $0xe90] sm:$0xff]  ;;  %v3217_v54 = vld [vmem:[#allocation2 + $0xf28] sm:$0xff]  ;;  %v3219_v39 = vld [vmem:[#allocation2 + $0xf38] sm:$0xff] }
 0xca0   :  { %5052 = vmatpush1.bf16.msra.mxu1 %v5051_v42  ;;  %v3203_v42 = vld [vmem:[#allocation2 + $0xeb8] sm:$0xff] }
 0xca1   :  { %5086 = vmatprep.subr.bf16.mxu1 %v5085_v12  ;;  %v5129_v10 = vpack.c.bf16 %v3203_v42, %v3201_v0  ;;  %v3202_v12 = vld [vmem:[#allocation2 + $0xeb0] sm:$0xff]  ;;  %v3437_v0 = vld [vmem:[#allocation2 + $0x1048] sm:$0xff]  ;;  %v3439_v42 = vld [vmem:[#allocation2 + $0x1058] sm:$0xff] }
 0xd56   :  { %v2721_v27 = vpop.f32.mrb[24].mxu1 }
 0xd57   :  { %v2722_v28 = vadd.f32 %v2721_v27, %v2654_v26  ;;  %v4720_v29 = vpop.f32.mrb[25].mxu1  ;;  %v2956_v26 = vld [vmem:[#allocation2 + $0xcc8] sm:$0xff]  ;;  %v2958_v27 = vld [vmem:[#allocation2 + $0xcd8] sm:$0xff] }
 0xd58   :  { %v2955_v29 = vld [vmem:[#allocation2 + $0xcc0] sm:$0xff] }
 0xd59   :  { %v2725_v30 = vmax.f32 %v2722_v28, 0.0  ;;  %v5069_v28 = vpack.c.bf16 %v2958_v27, %v2956_v26  ;;  %v1836_v26 = vadd.f32 %v5578_v9, %v1765_v24  ;;  %v3075_v9 = vld [vmem:[#allocation2 + $0xd98] sm:$0xff] }
 0xd5b   :  { %4726 = vmatmul.mubr.msk.f32.vlgmr.msra.gmra.mrb[28].mxu0 %vm150_vm2, %v2725_v30  ;;  %v2957_v30 = vld [vmem:[#allocation2 + $0xcd0] sm:$0xff] }
 0xd5c   :  { %3038 = vmatprep.mubr.f32.mxu0 %v5399_v32  ;;  %5056 = vmatpush1.bf16.msra.mxu0 %v5055_v48  ;;  %v5071_v31 = vpack.c.bf16 %v2957_v30, %v2955_v29  ;;  %v2961_v48 = vld [vmem:[#allocation2 + $0xcf0] sm:$0xff]  ;;  %v3069_v30 = vld [vmem:[#allocation2 + $0xd68] sm:$0xff] }
 0xd5d   :  { %5058 = vmatprep.subr.bf16.mxu0 %v5057_v56  ;;  %v5075_v49 = vpack.c.bf16 %v2961_v48, %v2959_v47  ;;  %v2966_v56 = vld [vmem:[#allocation2 + $0xd18] sm:$0xff]  ;;  %v3066_v29 = vld [vmem:[#allocation2 + $0xd50] sm:$0xff]  ;;  %v5119_v48 = vpack.c.bf16 %v3190_v36, %v3188_v35  ;;  %v3208_v36 = vld [vmem:[#allocation2 + $0xee0] sm:$0xff] }
 0xd5e   :  { %v5077_v40 = vpack.c.bf16 %v2966_v56, %v2964_v55  ;;  %v3070_v47 = vld [vmem:[#allocation2 + $0xd70] sm:$0xff]  ;;  %v3072_v56 = vld [vmem:[#allocation2 + $0xd80] sm:$0xff] }
 0xd60   :  { %5060 = vmatpush1.bf16.msra.mxu0 %v5059_v58  ;;  %v2965_v58 = vld [vmem:[#allocation2 + $0xd10] sm:$0xff] }
 0xd61   :  { %5062 = vmatprep.subr.bf16.mxu0 %v5061_v4  ;;  %v5079_v33 = vpack.c.bf16 %v2965_v58, %v2963_v57  ;;  %v2970_v4 = vld [vmem:[#allocation2 + $0xd38] sm:$0xff]  ;;  %v5123_v57 = vpack.c.bf16 %v3194_v52, %v3192_v51  ;;  %v3077_v58 = vld [vmem:[#allocation2 + $0xda8] sm:$0xff]  ;;  %v3212_v51 = vld [vmem:[#allocation2 + $0xf00] sm:$0xff] }
 0xd62   :  { %v5081_v5 = vpack.c.bf16 %v2970_v4, %v2968_v3  ;;  %v3076_v4 = vld [vmem:[#allocation2 + $0xda0] sm:$0xff]  ;;  %v3214_v52 = vld [vmem:[#allocation2 + $0xf10] sm:$0xff] }
 0xd64   :  { %5064 = vmatpush1.bf16.msra.mxu0 %v5063_v7  ;;  %v2969_v7 = vld [vmem:[#allocation2 + $0xd30] sm:$0xff] }
 0xd65   :  { %5066 = vmatprep.subr.bf16.mxu0 %v5065_v18  ;;  %v5083_v8 = vpack.c.bf16 %v2969_v7, %v2967_v6  ;;  %v5127_v6 = vpack.c.bf16 %v3198_v60, %v3196_v59  ;;  %v3081_v7 = vld [vmem:[#allocation2 + $0xdc8] sm:$0xff]  ;;  %v3216_v59 = vld [vmem:[#allocation2 + $0xf20] sm:$0xff]  ;;  %v3218_v60 = vld [vmem:[#allocation2 + $0xf30] sm:$0xff] }
 0xd68   :  { %5068 = vmatpush1.bf16.msra.mxu0 %v5067_v19 }
 0xd69   :  { %5070 = vmatprep.subr.bf16.mxu0 %v5069_v28  ;;  %v3064_v28 = vld [vmem:[#allocation2 + $0xd40] sm:$0xff] }
 0xd6a   :  { %v5087_v37 = vpack.c.bf16 %v3066_v29, %v3064_v28  ;;  %v3084_v28 = vld [vmem:[#allocation2 + $0xde0] sm:$0xff]  ;;  %v3086_v29 = vld [vmem:[#allocation2 + $0xdf0] sm:$0xff] }
 0xd6b   :  { %v5107_v38 = vpack.c.bf16 %v3086_v29, %v3084_v28  ;;  %v3447_v28 = vld [vmem:[#allocation2 + $0x1098] sm:$0xff] }
 0xd6c   :  { %5072 = vmatpush1.bf16.msra.mxu0 %v5071_v31  ;;  %v3071_v31 = vld [vmem:[#allocation2 + $0xd78] sm:$0xff] }
 0xd6d   :  { %5074 = vmatprep.subr.bf16.mxu0 %v5073_v46  ;;  %v5089_v45 = vpack.c.bf16 %v3071_v31, %v3069_v30  ;;  %v3068_v46 = vld [vmem:[#allocation2 + $0xd60] sm:$0xff]  ;;  %v3089_v31 = vld [vmem:[#allocation2 + $0xe08] sm:$0xff] }
 0xd6e   :  { %v5091_v53 = vpack.c.bf16 %v3070_v47, %v3068_v46  ;;  %v3088_v47 = vld [vmem:[#allocation2 + $0xe00] sm:$0xff] }
 0xd70   :  { %5076 = vmatpush1.bf16.msra.mxu0 %v5075_v49  ;;  %v3073_v49 = vld [vmem:[#allocation2 + $0xd88] sm:$0xff] }
 0xd71   :  { %5078 = vmatprep.subr.bf16.mxu0 %v5077_v40  ;;  %v5093_v55 = vpack.c.bf16 %v3075_v9, %v3073_v49  ;;  %v3074_v40 = vld [vmem:[#allocation2 + $0xd90] sm:$0xff]  ;;  %v3093_v9 = vld [vmem:[#allocation2 + $0xe28] sm:$0xff] }
 0xd72   :  { %v5095_v62 = vpack.c.bf16 %v3074_v40, %v3072_v56  ;;  %v3092_v56 = vld [vmem:[#allocation2 + $0xe20] sm:$0xff]  ;;  %v3094_v40 = vld [vmem:[#allocation2 + $0xe30] sm:$0xff] }
 0xd74   :  { %5080 = vmatpush1.bf16.msra.mxu0 %v5079_v33  ;;  %v3079_v33 = vld [vmem:[#allocation2 + $0xdb8] sm:$0xff] }
 0xd75   :  { %5082 = vmatprep.subr.bf16.mxu0 %v5081_v5  ;;  %v5097_v3 = vpack.c.bf16 %v3079_v33, %v3077_v58  ;;  %v3078_v5 = vld [vmem:[#allocation2 + $0xdb0] sm:$0xff]  ;;  %v3313_v58 = vld [vmem:[#allocation2 + $0xf48] sm:$0xff]  ;;  %v3315_v33 = vld [vmem:[#allocation2 + $0xf58] sm:$0xff] }
 0xd76   :  { %v5099_v13 = vpack.c.bf16 %v3078_v5, %v3076_v4  ;;  %v3312_v4 = vld [vmem:[#allocation2 + $0xf40] sm:$0xff]  ;;  %v3314_v5 = vld [vmem:[#allocation2 + $0xf50] sm:$0xff] }
 0xd78   :  { %5084 = vmatpush1.bf16.msra.mxu0 %v5083_v8  ;;  %v3083_v8 = vld [vmem:[#allocation2 + $0xdd8] sm:$0xff] }
 0xd79   :  { %5118 = vmatprep.subr.bf16.mxu0 %v5117_v15  ;;  %v3207_v15 = vld [vmem:[#allocation2 + $0xed8] sm:$0xff] }
 0xe2e   :  { %v2798_v18 = vpop.f32.mrb[28].mxu0 }
 0xe2f   :  { %v2799_v61 = vadd.f32 %v2798_v18, %v2728_v16  ;;  %v4727_v63 = vpop.f32.mrb[29].mxu0  ;;  %v5101_v16 = vpack.c.bf16 %v3083_v8, %v3081_v7  ;;  %v3080_v18 = vld [vmem:[#allocation2 + $0xdc0] sm:$0xff]  ;;  %v3317_v7 = vld [vmem:[#allocation2 + $0xf68] sm:$0xff]  ;;  %v3319_v8 = vld [vmem:[#allocation2 + $0xf78] sm:$0xff] }
 0xe30   :  { %v5131_v63 = vpack.c.bf16 %v3202_v12, %v3200_v11  ;;  %v3436_v11 = vld [vmem:[#allocation2 + $0x1040] sm:$0xff]  ;;  %v3438_v12 = vld [vmem:[#allocation2 + $0x1050] sm:$0xff] }
 0xe31   :  { %v2802_v19 = vsub.f32 0.0, %v2799_v61  ;;  %v3082_v61 = vld [vmem:[#allocation2 + $0xdd0] sm:$0xff] }
 0xe32   :  { %v5103_v24 = vpack.c.bf16 %v3082_v61, %v3080_v18  ;;  %v5153_v18 = vpack.c.bf16 %v3319_v8, %v3317_v7  ;;  %v3316_v61 = vld [vmem:[#allocation2 + $0xf60] sm:$0xff]  ;;  %v3334_v7 = vld [vmem:[#allocation2 + $0xff0] sm:$0xff] }
 0xe33   :  { %v2803_v20 = vmul.f32 1.442695, %v2802_v19  ;;  %v3085_v19 = vld [vmem:[#allocation2 + $0xde8] sm:$0xff] }
 0xe35   :  { %5339 = vpow2.f32 %v2803_v20  ;;  %v3087_v20 = vld [vmem:[#allocation2 + $0xdf8] sm:$0xff] }
 0xe3f   :  { %v5340_v21 = vpop.eup %5339 }
 0xe40   :  { %v2805_v23 = vadd.f32 1.0, %v5340_v21  ;;  %v5133_v21 = vpack.c.bf16 %v3207_v15, %v3205_v14  ;;  %v3441_v14 = vld [vmem:[#allocation2 + $0x1068] sm:$0xff]  ;;  %v3443_v15 = vld [vmem:[#allocation2 + $0x1078] sm:$0xff] }
 0xe42   :  { %5341 = vrcp.f32 %v2805_v23  ;;  %v3204_v23 = vld [vmem:[#allocation2 + $0xec0] sm:$0xff] }
 0xe4c   :  { %v5342_v22 = vpop.eup %5341 }
 0xe4d   :  { %v2811_v25 = vrot.slane %v5342_v22, %v5529_v2  ;;  %v3206_v22 = vld [vmem:[#allocation2 + $0xed0] sm:$0xff] }
 0xe4e   :  { %v5135_v30 = vpack.c.bf16 %v3206_v22, %v3204_v23  ;;  %v5185_v22 = vpack.c.bf16 %v3443_v15, %v3441_v14  ;;  %v3458_v14 = vld [vmem:[#allocation2 + $0x10f0] sm:$0xff] }
 0xe4f   :  { %v2812_v27 = vmul.f32 %v2811_v25, %v5633_v17  ;;  %v3209_v25 = vld [vmem:[#allocation2 + $0xee8] sm:$0xff] }
 0xe51   :  { %v2813_v34 = vadd.f32 %v2812_v27, %v1836_v26  ;;  %v3211_v26 = vld [vmem:[#allocation2 + $0xef8] sm:$0xff]  ;;  %v5105_v27 = vpack.c.bf16 %v3087_v20, %v3085_v19  ;;  %v5183_v19 = vpack.c.bf16 %v3438_v12, %v3436_v11  ;;  %v3321_v20 = vld [vmem:[#allocation2 + $0xf88] sm:$0xff] }
 0xe52   :  { %v5137_v35 = vpack.c.bf16 %v3211_v26, %v3209_v25  ;;  %v3442_v25 = vld [vmem:[#allocation2 + $0x1070] sm:$0xff]  ;;  %v3339_v11 = vld [vmem:[#allocation2 + $0x1018] sm:$0xff] }
 0xe53   :  { %v5643_v44 = vmax.f32 %v2813_v34, 0.0  ;;  %v3091_v34 = vld [vmem:[#allocation2 + $0xe18] sm:$0xff] }
 0xe54   :  { %v5109_v46 = vpack.c.bf16 %v3091_v34, %v3089_v31  ;;  %v3322_v31 = vld [vmem:[#allocation2 + $0xf90] sm:$0xff] }
 0xe55   :  { %2914 = vmatmul.mubr.f32.vlgmr.msra.gmra.mrb[26].mxu1 %v5643_v44  ;;  %v2972_v17 = vrot.slane %v5643_v44, 1  ;;  %v3220_v23 = vrot.slane %v5643_v44, 3 }
 0xe56   :  { %5088 = vmatpush1.bf16.msra.mxu1 %v5087_v37  ;;  %3162 = vmatprep.mubr.f32.mxu1 %v5399_v32  ;;  %v3210_v37 = vld [vmem:[#allocation2 + $0xef0] sm:$0xff] }
 0xe57   :  { %3039 = vmatmul.mubr.f32.vlgmr.msra.gmra.mrb[30].mxu0 %v2972_v17  ;;  %5090 = vmatprep.subr.bf16.mxu1 %v5089_v45  ;;  %v3215_v45 = vld [vmem:[#allocation2 + $0xf18] sm:$0xff]  ;;  %v5139_v49 = vpack.c.bf16 %v3210_v37, %v3208_v36 }
 0xe58   :  { %5120 = vmatpush1.bf16.msra.mxu0 %v5119_v48  ;;  %3286 = vmatprep.mubr.f32.mxu0 %v5399_v32  ;;  %v3090_v48 = vld [vmem:[#allocation2 + $0xe10] sm:$0xff]  ;;  %v3095_v17 = vld [vmem:[#allocation2 + $0xe38] sm:$0xff] }
 0xe59   :  { %5122 = vmatprep.subr.bf16.mxu0 %v5121_v50  ;;  %v5141_v50 = vpack.c.bf16 %v3215_v45, %v3213_v43  ;;  %v3327_v36 = vld [vmem:[#allocation2 + $0xfb8] sm:$0xff]  ;;  %v3446_v43 = vld [vmem:[#allocation2 + $0x1090] sm:$0xff] }
 0xe5a   :  { %5092 = vmatpush1.bf16.msra.mxu1 %v5091_v53  ;;  %v5111_v53 = vpack.c.bf16 %v3090_v48, %v3088_v47  ;;  %v3451_v47 = vld [vmem:[#allocation2 + $0x10b8] sm:$0xff] }
 0xe5b   :  { %5094 = vmatprep.subr.bf16.mxu1 %v5093_v55  ;;  %v5113_v55 = vpack.c.bf16 %v3095_v17, %v3093_v9  ;;  %v3326_v9 = vld [vmem:[#allocation2 + $0xfb0] sm:$0xff] }
 0xe5c   :  { %5124 = vmatpush1.bf16.msra.mxu0 %v5123_v57  ;;  %v5143_v57 = vpack.c.bf16 %v3214_v52, %v3212_v51  ;;  %v3331_v51 = vld [vmem:[#allocation2 + $0xfd8] sm:$0xff] }
 0xe5d   :  { %5126 = vmatprep.subr.bf16.mxu0 %v5125_v41  ;;  %v5145_v41 = vpack.c.bf16 %v3219_v39, %v3217_v54  ;;  %v3450_v54 = vld [vmem:[#allocation2 + $0x10b0] sm:$0xff] }
 0xe5e   :  { %5096 = vmatpush1.bf16.msra.mxu1 %v5095_v62  ;;  %v5115_v62 = vpack.c.bf16 %v3094_v40, %v3092_v56  ;;  %v3455_v56 = vld [vmem:[#allocation2 + $0x10d8] sm:$0xff] }
 0xe5f   :  { %5098 = vmatprep.subr.bf16.mxu1 %v5097_v3  ;;  %v5149_v3 = vpack.c.bf16 %v3315_v33, %v3313_v58  ;;  %v3330_v58 = vld [vmem:[#allocation2 + $0xfd0] sm:$0xff] }
 0xe60   :  { %5128 = vmatpush1.bf16.msra.mxu0 %v5127_v6  ;;  %v5147_v6 = vpack.c.bf16 %v3218_v60, %v3216_v59  ;;  %v3335_v59 = vld [vmem:[#allocation2 + $0xff8] sm:$0xff] }
 0xe61   :  { %5130 = vmatprep.subr.bf16.mxu0 %v5129_v10  ;;  %v5181_v10 = vpack.c.bf16 %v3439_v42, %v3437_v0  ;;  %v3454_v0 = vld [vmem:[#allocation2 + $0x10d0] sm:$0xff] }
 0xe62   :  { %5100 = vmatpush1.bf16.msra.mxu1 %v5099_v13  ;;  %v5151_v13 = vpack.c.bf16 %v3314_v5, %v3312_v4  ;;  %v3459_v4 = vld [vmem:[#allocation2 + $0x10f8] sm:$0xff] }
 0xe63   :  { %5102 = vmatprep.subr.bf16.mxu1 %v5101_v16  ;;  %v3096_v16 = vrot.slane %v5643_v44, 2 }
 0xe64   :  { %5132 = vmatpush1.bf16.msra.mxu0 %v5131_v63  ;;  %v3318_v63 = vld [vmem:[#allocation2 + $0xf70] sm:$0xff] }
 0xe65   :  { %5134 = vmatprep.subr.bf16.mxu0 %v5133_v21  ;;  %v3323_v21 = vld [vmem:[#allocation2 + $0xf98] sm:$0xff]  ;;  %v5155_v26 = vpack.c.bf16 %v3318_v63, %v3316_v61  ;;  %v3336_v63 = vld [vmem:[#allocation2 + $0x1000] sm:$0xff] }
 0xe66   :  { %5104 = vmatpush1.bf16.msra.mxu1 %v5103_v24  ;;  %v3440_v24 = vld [vmem:[#allocation2 + $0x1060] sm:$0xff]  ;;  %v5157_v29 = vpack.c.bf16 %v3323_v21, %v3321_v20  ;;  %v3341_v21 = vld [vmem:[#allocation2 + $0x1028] sm:$0xff] }
 0xe67   :  { %5106 = vmatprep.subr.bf16.mxu1 %v5105_v27  ;;  %v3445_v27 = vld [vmem:[#allocation2 + $0x1088] sm:$0xff]  ;;  %v5187_v34 = vpack.c.bf16 %v3442_v25, %v3440_v24  ;;  %v3460_v24 = vld [vmem:[#allocation2 + $0x1100] sm:$0xff]  ;;  %v3462_v25 = vld [vmem:[#allocation2 + $0x1110] sm:$0xff] }
 0xe68   :  { %5136 = vmatpush1.bf16.msra.mxu0 %v5135_v30  ;;  %v3320_v30 = vld [vmem:[#allocation2 + $0xf80] sm:$0xff]  ;;  %v5189_v37 = vpack.c.bf16 %v3447_v28, %v3445_v27  ;;  %v3465_v27 = vld [vmem:[#allocation2 + $0x1128] sm:$0xff]  ;;  %v3467_v28 = vld [vmem:[#allocation2 + $0x1138] sm:$0xff] }
 0xe69   :  { %5138 = vmatprep.subr.bf16.mxu0 %v5137_v35  ;;  %v3325_v35 = vld [vmem:[#allocation2 + $0xfa8] sm:$0xff]  ;;  %v5159_v45 = vpack.c.bf16 %v3322_v31, %v3320_v30  ;;  %v3340_v30 = vld [vmem:[#allocation2 + $0x1020] sm:$0xff]  ;;  %v3342_v31 = vld [vmem:[#allocation2 + $0x1030] sm:$0xff] }
 0xe6a   :  { %5108 = vmatpush1.bf16.msra.mxu1 %v5107_v38  ;;  %v3444_v38 = vld [vmem:[#allocation2 + $0x1080] sm:$0xff]  ;;  %v5161_v48 = vpack.c.bf16 %v3327_v36, %v3325_v35  ;;  %v3561_v35 = vld [vmem:[#allocation2 + $0x1148] sm:$0xff]  ;;  %v3563_v36 = vld [vmem:[#allocation2 + $0x1158] sm:$0xff] }
 0xe6b   :  { %5110 = vmatprep.subr.bf16.mxu1 %v5109_v46  ;;  %v3449_v46 = vld [vmem:[#allocation2 + $0x10a8] sm:$0xff]  ;;  %v5191_v17 = vpack.c.bf16 %v3446_v43, %v3444_v38  ;;  %v3464_v38 = vld [vmem:[#allocation2 + $0x1120] sm:$0xff]  ;;  %v3466_v43 = vld [vmem:[#allocation2 + $0x1130] sm:$0xff] }
 0xe6c   :  { %5140 = vmatpush1.bf16.msra.mxu0 %v5139_v49  ;;  %v3324_v49 = vld [vmem:[#allocation2 + $0xfa0] sm:$0xff]  ;;  %v5193_v52 = vpack.c.bf16 %v3451_v47, %v3449_v46  ;;  %v3685_v46 = vld [vmem:[#allocation2 + $0x1248] sm:$0xff]  ;;  %v3687_v47 = vld [vmem:[#allocation2 + $0x1258] sm:$0xff] }
 0xe6d   :  { %5142 = vmatprep.subr.bf16.mxu0 %v5141_v50  ;;  %v3329_v50 = vld [vmem:[#allocation2 + $0xfc8] sm:$0xff]  ;;  %v5163_v39 = vpack.c.bf16 %v3326_v9, %v3324_v49  ;;  %v3560_v49 = vld [vmem:[#allocation2 + $0x1140] sm:$0xff]  ;;  %v3562_v9 = vld [vmem:[#allocation2 + $0x1150] sm:$0xff] }
 0xe6e   :  { %5112 = vmatpush1.bf16.msra.mxu1 %v5111_v53  ;;  %v3448_v53 = vld [vmem:[#allocation2 + $0x10a0] sm:$0xff]  ;;  %v5165_v40 = vpack.c.bf16 %v3331_v51, %v3329_v50  ;;  %v3565_v50 = vld [vmem:[#allocation2 + $0x1168] sm:$0xff]  ;;  %v3567_v51 = vld [vmem:[#allocation2 + $0x1178] sm:$0xff] }
 0xe6f   :  { %5114 = vmatprep.subr.bf16.mxu1 %v5113_v55  ;;  %v3453_v55 = vld [vmem:[#allocation2 + $0x10c8] sm:$0xff]  ;;  %v5195_v33 = vpack.c.bf16 %v3450_v54, %v3448_v53  ;;  %v3684_v53 = vld [vmem:[#allocation2 + $0x1240] sm:$0xff]  ;;  %v3686_v54 = vld [vmem:[#allocation2 + $0x1250] sm:$0xff] }
 0xe70   :  { %5144 = vmatpush1.bf16.msra.mxu0 %v5143_v57  ;;  %v3328_v57 = vld [vmem:[#allocation2 + $0xfc0] sm:$0xff]  ;;  %v5197_v60 = vpack.c.bf16 %v3455_v56, %v3453_v55  ;;  %v3689_v55 = vld [vmem:[#allocation2 + $0x1268] sm:$0xff]  ;;  %v3691_v56 = vld [vmem:[#allocation2 + $0x1278] sm:$0xff] }
 0xe71   :  { %5146 = vmatprep.subr.bf16.mxu0 %v5145_v41  ;;  %v3333_v41 = vld [vmem:[#allocation2 + $0xfe8] sm:$0xff]  ;;  %v5167_v42 = vpack.c.bf16 %v3330_v58, %v3328_v57  ;;  %v5217_v57 = vpack.c.bf16 %v3567_v51, %v3565_v50  ;;  %v3564_v58 = vld [vmem:[#allocation2 + $0x1160] sm:$0xff] }
 0xe72   :  { %5116 = vmatpush1.bf16.msra.mxu1 %v5115_v62  ;;  %v3452_v62 = vld [vmem:[#allocation2 + $0x10c0] sm:$0xff]  ;;  %v5169_v5 = vpack.c.bf16 %v3335_v59, %v3333_v41  ;;  %v5247_v41 = vpack.c.bf16 %v3686_v54, %v3684_v53  ;;  %v3569_v59 = vld [vmem:[#allocation2 + $0x1188] sm:$0xff] }
 0xe73   :  { %5150 = vmatprep.subr.bf16.mxu1 %v5149_v3  ;;  %v3457_v3 = vld [vmem:[#allocation2 + $0x10e8] sm:$0xff]  ;;  %v5199_v8 = vpack.c.bf16 %v3454_v0, %v3452_v62  ;;  %v3468_v62 = vrot.slane %v5643_v44, 5  ;;  %v5249_v0 = vpack.c.bf16 %v3691_v56, %v3689_v55  ;;  %v3704_v54 = vld [vmem:[#allocation2 + $0x12e0] sm:$0xff] }
 0xe74   :  { %5148 = vmatpush1.bf16.msra.mxu0 %v5147_v6  ;;  %v3332_v6 = vld [vmem:[#allocation2 + $0xfe0] sm:$0xff]  ;;  %v5201_v12 = vpack.c.bf16 %v3459_v4, %v3457_v3  ;;  %v3690_v3 = vld [vmem:[#allocation2 + $0x1270] sm:$0xff]  ;;  %v3585_v51 = vld [vmem:[#allocation2 + $0x1208] sm:$0xff] }
 0xe75   :  { %3163 = vmatmul.mubr.f32.vlgmr.msra.gmra.mrb[28].mxu1 %v3096_v16  ;;  %5182 = vmatprep.subr.bf16.mxu0 %v5181_v10  ;;  %v3337_v10 = vld [vmem:[#allocation2 + $0x1008] sm:$0xff]  ;;  %v5171_v15 = vpack.c.bf16 %v3334_v7, %v3332_v6  ;;  %v3695_v6 = vld [vmem:[#allocation2 + $0x1298] sm:$0xff] }
 0xe76   :  { %5152 = vmatpush1.bf16.msra.mxu1 %v5151_v13  ;;  %3410 = vmatprep.mubr.f32.mxu1 %v5399_v32  ;;  %v3456_v13 = vld [vmem:[#allocation2 + $0x10e0] sm:$0xff]  ;;  %v3461_v16 = vld [vmem:[#allocation2 + $0x1108] sm:$0xff]  ;;  %v5173_v61 = vpack.c.bf16 %v3339_v11, %v3337_v10  ;;  %v3570_v10 = vld [vmem:[#allocation2 + $0x1190] sm:$0xff] }
 0xe77   :  { %3287 = vmatmul.mubr.f32.vlgmr.msra.gmra.mrb[32].mxu0 %v3220_v23  ;;  %5154 = vmatprep.subr.bf16.mxu1 %v5153_v18  ;;  %v3463_v18 = vld [vmem:[#allocation2 + $0x1118] sm:$0xff]  ;;  %v5203_v20 = vpack.c.bf16 %v3458_v14, %v3456_v13  ;;  %v3709_v56 = vld [vmem:[#allocation2 + $0x1308] sm:$0xff] }
 0xe78   :  { %5184 = vmatpush1.bf16.msra.mxu0 %v5183_v19  ;;  %3534 = vmatprep.mubr.f32.mxu0 %v5399_v32  ;;  %v3338_v19 = vld [vmem:[#allocation2 + $0x1010] sm:$0xff]  ;;  %v3343_v23 = vld [vmem:[#allocation2 + $0x1038] sm:$0xff] }
 0xe79   :  { %5186 = vmatprep.subr.bf16.mxu0 %v5185_v22  ;;  %v5205_v22 = vpack.c.bf16 %v3463_v18, %v3461_v16  ;;  %v3575_v13 = vld [vmem:[#allocation2 + $0x11b8] sm:$0xff]  ;;  %v3694_v16 = vld [vmem:[#allocation2 + $0x1290] sm:$0xff] }
 0xe7a   :  { %5156 = vmatpush1.bf16.msra.mxu1 %v5155_v26  ;;  %v5175_v26 = vpack.c.bf16 %v3338_v19, %v3336_v63  ;;  %v3699_v63 = vld [vmem:[#allocation2 + $0x12b8] sm:$0xff] }
 0xe7b   :  { %5158 = vmatprep.subr.bf16.mxu1 %v5157_v29  ;;  %v5177_v29 = vpack.c.bf16 %v3343_v23, %v3341_v21  ;;  %v3574_v21 = vld [vmem:[#allocation2 + $0x11b0] sm:$0xff] }
 0xe7c   :  { %5188 = vmatpush1.bf16.msra.mxu0 %v5187_v34  ;;  %v5207_v34 = vpack.c.bf16 %v3462_v25, %v3460_v24  ;;  %v3579_v24 = vld [vmem:[#allocation2 + $0x11d8] sm:$0xff] }
 0xe7d   :  { %5190 = vmatprep.subr.bf16.mxu0 %v5189_v37  ;;  %v5209_v37 = vpack.c.bf16 %v3467_v28, %v3465_v27  ;;  %v3701_v28 = vld [vmem:[#allocation2 + $0x12c8] sm:$0xff] }
 0xe7e   :  { %5160 = vmatpush1.bf16.msra.mxu1 %v5159_v45  ;;  %v5179_v45 = vpack.c.bf16 %v3342_v31, %v3340_v30  ;;  %v3576_v31 = vld [vmem:[#allocation2 + $0x11c0] sm:$0xff] }
 0xe7f   :  { %5162 = vmatprep.subr.bf16.mxu1 %v5161_v48  ;;  %v5213_v48 = vpack.c.bf16 %v3563_v36, %v3561_v35  ;;  %v3581_v36 = vld [vmem:[#allocation2 + $0x11e8] sm:$0xff] }
 0xe80   :  { %5192 = vmatpush1.bf16.msra.mxu0 %v5191_v17  ;;  %v5211_v17 = vpack.c.bf16 %v3466_v43, %v3464_v38  ;;  %v3700_v43 = vld [vmem:[#allocation2 + $0x12c0] sm:$0xff] }
 0xe81   :  { %5194 = vmatprep.subr.bf16.mxu0 %v5193_v52  ;;  %v5245_v52 = vpack.c.bf16 %v3687_v47, %v3685_v46  ;;  %v3705_v47 = vld [vmem:[#allocation2 + $0x12e8] sm:$0xff] }
 0xe82   :  { %5164 = vmatpush1.bf16.msra.mxu1 %v5163_v39  ;;  %v5215_v39 = vpack.c.bf16 %v3562_v9, %v3560_v49  ;;  %v3580_v9 = vld [vmem:[#allocation2 + $0x11e0] sm:$0xff] }
 0xe83   :  { %5166 = vmatprep.subr.bf16.mxu1 %v5165_v40  ;;  %v3344_v40 = vrot.slane %v5643_v44, 4 }
 0xe84   :  { %5196 = vmatpush1.bf16.msra.mxu0 %v5195_v33  ;;  %v3566_v33 = vld [vmem:[#allocation2 + $0x1170] sm:$0xff] }
 0xe85   :  { %5198 = vmatprep.subr.bf16.mxu0 %v5197_v60  ;;  %v3571_v60 = vld [vmem:[#allocation2 + $0x1198] sm:$0xff]  ;;  %v5219_v4 = vpack.c.bf16 %v3566_v33, %v3564_v58  ;;  %v3584_v58 = vld [vmem:[#allocation2 + $0x1200] sm:$0xff]  ;;  %v3586_v33 = vld [vmem:[#allocation2 + $0x1210] sm:$0xff] }
 0xe86   :  { %5168 = vmatpush1.bf16.msra.mxu1 %v5167_v42  ;;  %v3688_v42 = vld [vmem:[#allocation2 + $0x1260] sm:$0xff]  ;;  %v5221_v7 = vpack.c.bf16 %v3571_v60, %v3569_v59  ;;  %v3589_v59 = vld [vmem:[#allocation2 + $0x1228] sm:$0xff]  ;;  %v3591_v60 = vld [vmem:[#allocation2 + $0x1238] sm:$0xff] }
 0xe87   :  { %5170 = vmatprep.subr.bf16.mxu1 %v5169_v5  ;;  %v3693_v5 = vld [vmem:[#allocation2 + $0x1288] sm:$0xff]  ;;  %v5251_v11 = vpack.c.bf16 %v3690_v3, %v3688_v42  ;;  %v3710_v42 = vld [vmem:[#allocation2 + $0x1310] sm:$0xff]  ;;  %v5239_v3 = vpack.c.bf16 %v3586_v33, %v3584_v58 }
 0xe88   :  { %5200 = vmatpush1.bf16.msra.mxu0 %v5199_v8  ;;  %v3568_v8 = vld [vmem:[#allocation2 + $0x1180] sm:$0xff]  ;;  %v5253_v14 = vpack.c.bf16 %v3695_v6, %v3693_v5  ;;  %v3715_v5 = vld [vmem:[#allocation2 + $0x1338] sm:$0xff]  ;;  %v5241_v6 = vpack.c.bf16 %v3591_v60, %v3589_v59  ;;  %v3829_v33 = vld [vmem:[#allocation2 + $0x1410] sm:$0xff] }
 0xe89   :  { %5202 = vmatprep.subr.bf16.mxu0 %v5201_v12  ;;  %v3573_v12 = vld [vmem:[#allocation2 + $0x11a8] sm:$0xff]  ;;  %v5223_v18 = vpack.c.bf16 %v3570_v10, %v3568_v8  ;;  %v3590_v8 = vld [vmem:[#allocation2 + $0x1230] sm:$0xff]  ;;  %v3848_v60 = vld [vmem:[#allocation2 + $0x1540] sm:$0xff] }
 0xe8a   :  { %5172 = vmatpush1.bf16.msra.mxu1 %v5171_v15  ;;  %v3692_v15 = vld [vmem:[#allocation2 + $0x1280] sm:$0xff]  ;;  %v5225_v19 = vpack.c.bf16 %v3575_v13, %v3573_v12  ;;  %v3714_v13 = vld [vmem:[#allocation2 + $0x1330] sm:$0xff] }
 0xe8b   :  { %5174 = vmatprep.subr.bf16.mxu1 %v5173_v61  ;;  %v3697_v61 = vld [vmem:[#allocation2 + $0x12a8] sm:$0xff]  ;;  %v5255_v23 = vpack.c.bf16 %v3694_v16, %v3692_v15  ;;  %v3712_v12 = vld [vmem:[#allocation2 + $0x1320] sm:$0xff]  ;;  %v3592_v16 = vrot.slane %v5643_v44, 6  ;;  %v3847_v59 = vld [vmem:[#allocation2 + $0x1530] sm:$0xff] }
 0xe8c   :  { %5204 = vmatpush1.bf16.msra.mxu0 %v5203_v20  ;;  %v3572_v20 = vld [vmem:[#allocation2 + $0x11a0] sm:$0xff]  ;;  %v5257_v25 = vpack.c.bf16 %v3699_v63, %v3697_v61  ;;  %v5275_v15 = vpack.c.bf16 %v3714_v13, %v3712_v12  ;;  %v3833_v61 = vld [vmem:[#allocation2 + $0x1450] sm:$0xff] }
 0xe8d   :  { %5206 = vmatprep.subr.bf16.mxu0 %v5205_v22  ;;  %v3577_v22 = vld [vmem:[#allocation2 + $0x11c8] sm:$0xff]  ;;  %v5227_v27 = vpack.c.bf16 %v3574_v21, %v3572_v20  ;;  %v3834_v63 = vld [vmem:[#allocation2 + $0x1460] sm:$0xff]  ;;  %v3817_v20 = vld [vmem:[#allocation2 + $0x1350] sm:$0xff] }
 0xe8e   :  { %5176 = vmatpush1.bf16.msra.mxu1 %v5175_v26  ;;  %v3696_v26 = vld [vmem:[#allocation2 + $0x12a0] sm:$0xff]  ;;  %v5229_v30 = vpack.c.bf16 %v3579_v24, %v3577_v22  ;;  %v3835_v22 = vld [vmem:[#allocation2 + $0x1470] sm:$0xff] }
 0xe8f   :  { %5178 = vmatprep.subr.bf16.mxu1 %v5177_v29  ;;  %v3703_v29 = vld [vmem:[#allocation2 + $0x12d8] sm:$0xff]  ;;  %v3818_v21 = vld [vmem:[#allocation2 + $0x1360] sm:$0xff] }
 0xe90   :  { %5208 = vmatpush1.bf16.msra.mxu0 %v5207_v34  ;;  %v3578_v34 = vld [vmem:[#allocation2 + $0x11d0] sm:$0xff]  ;;  %v5261_v38 = vpack.c.bf16 %v3703_v29, %v3701_v28  ;;  %v3836_v24 = vld [vmem:[#allocation2 + $0x1480] sm:$0xff] }
 0xe91   :  { %5210 = vmatprep.subr.bf16.mxu0 %v5209_v37  ;;  %v3583_v37 = vld [vmem:[#allocation2 + $0x11f8] sm:$0xff]  ;;  %v5231_v46 = vpack.c.bf16 %v3578_v34, %v3576_v31  ;;  %v3838_v29 = vld [vmem:[#allocation2 + $0x14a0] sm:$0xff]  ;;  %v3839_v34 = vld [vmem:[#allocation2 + $0x14b0] sm:$0xff] }
 0xe92   :  { %5180 = vmatpush1.bf16.msra.mxu1 %v5179_v45  ;;  %v3702_v45 = vld [vmem:[#allocation2 + $0x12d0] sm:$0xff]  ;;  %v5233_v49 = vpack.c.bf16 %v3583_v37, %v3581_v36  ;;  %v3822_v31 = vld [vmem:[#allocation2 + $0x13a0] sm:$0xff] }
 0xe93   :  { %5214 = vmatprep.subr.bf16.mxu1 %v5213_v48  ;;  %v3707_v48 = vld [vmem:[#allocation2 + $0x12f8] sm:$0xff]  ;;  %v5263_v50 = vpack.c.bf16 %v3702_v45, %v3700_v43  ;;  %v3824_v43 = vld [vmem:[#allocation2 + $0x13c0] sm:$0xff]  ;;  %v3841_v45 = vld [vmem:[#allocation2 + $0x14d0] sm:$0xff] }
 0xe94   :  { %5212 = vmatpush1.bf16.msra.mxu0 %v5211_v17  ;;  %v3582_v17 = vld [vmem:[#allocation2 + $0x11f0] sm:$0xff]  ;;  %v5265_v53 = vpack.c.bf16 %v3707_v48, %v3705_v47 }
 0xe95   :  { %3411 = vmatmul.mubr.f32.vlgmr.msra.gmra.mrb[30].mxu1 %v3344_v40  ;;  %5246 = vmatprep.subr.bf16.mxu0 %v5245_v52  ;;  %v3587_v52 = vld [vmem:[#allocation2 + $0x1218] sm:$0xff]  ;;  %v5235_v55 = vpack.c.bf16 %v3582_v17, %v3580_v9  ;;  %v3826_v9 = vld [vmem:[#allocation2 + $0x13e0] sm:$0xff]  ;;  %v3843_v17 = vld [vmem:[#allocation2 + $0x14f0] sm:$0xff] }
 0xe96   :  { %5216 = vmatpush1.bf16.msra.mxu1 %v5215_v39  ;;  %3658 = vmatprep.mubr.f32.mxu1 %v5399_v32  ;;  %v3706_v39 = vld [vmem:[#allocation2 + $0x12f0] sm:$0xff]  ;;  %v3711_v40 = vld [vmem:[#allocation2 + $0x1318] sm:$0xff] }
 0xe97   :  { %3535 = vmatmul.mubr.f32.vlgmr.msra.gmra.mrb[34].mxu0 %v3468_v62  ;;  %5218 = vmatprep.subr.bf16.mxu1 %v5217_v57  ;;  %v5237_v57 = vpack.c.bf16 %v3587_v52, %v3585_v51  ;;  %v5269_v62 = vpack.c.bf16 %v3711_v40, %v3709_v56  ;;  %v5400_v56 = vmov 1966171168  }
 0xe98   :  { %5248 = vmatpush1.bf16.msra.mxu0 %v5247_v41  ;;  %3782 = vmatprep.mubr.f32.mxu0 %v5399_v32  ;;  %v3698_v32 = vld [vmem:[#allocation2 + $0x12b0] sm:$0xff]  ;;  %v5267_v41 = vpack.c.bf16 %v3706_v39, %v3704_v54  ;;  %v3828_v54 = vld [vmem:[#allocation2 + $0x1400] sm:$0xff]  ;;  %v2924_v40 = vunpack.c.l.s4 %v5400_v56 }
 0xe99   :  { %5250 = vmatprep.subr.bf16.mxu0 %v5249_v0  ;;  %v5259_v35 = vpack.c.bf16 %v3698_v32, %v3696_v26  ;;  %v3708_v0 = vld [vmem:[#allocation2 + $0x1300] sm:$0xff]  ;;  %v3819_v26 = vld [vmem:[#allocation2 + $0x1370] sm:$0xff] }
 0xe9a   :  { %5220 = vmatpush1.bf16.msra.mxu1 %v5219_v4  ;;  %v3713_v4 = vld [vmem:[#allocation2 + $0x1328] sm:$0xff]  ;;  %v5271_v10 = vpack.c.bf16 %v3710_v42, %v3708_v0  ;;  %v3820_v32 = vld [vmem:[#allocation2 + $0x1380] sm:$0xff]  ;;  %v3845_v39 = vld [vmem:[#allocation2 + $0x1510] sm:$0xff]  ;;  %v5305_v42 = vpack.c.bf16 %v3848_v60, %v3847_v59 }
 0xe9b   :  { %5222 = vmatprep.subr.bf16.mxu1 %v5221_v7  ;;  %v3588_v7 = vld [vmem:[#allocation2 + $0x1220] sm:$0xff]  ;;  %v5283_v28 = vpack.c.bf16 %v3820_v32, %v3819_v26 }
 0xe9c   :  { %5252 = vmatpush1.bf16.msra.mxu0 %v5251_v11  ;;  %v5273_v11 = vpack.c.bf16 %v3715_v5, %v3713_v4  ;;  %v3832_v4 = vld [vmem:[#allocation2 + $0x1440] sm:$0xff] }
 0xe9d   :  { %5254 = vmatprep.subr.bf16.mxu0 %v5253_v14  ;;  %v5243_v14 = vpack.c.bf16 %v3590_v8, %v3588_v7 }
 0xe9e   :  { %5224 = vmatpush1.bf16.msra.mxu1 %v5223_v18  ;;  %v3716_v18 = vrot.slane %v5643_v44, 7 }
 0xe9f   :  { %5226 = vmatprep.subr.bf16.mxu1 %v5225_v19  ;;  %v5277_v19 = vpack.c.bf16 %v3834_v63, %v3833_v61 }
 0xea0   :  { %5256 = vmatpush1.bf16.msra.mxu0 %v5255_v23  ;;  %v5279_v23 = vpack.c.bf16 %v3818_v21, %v3817_v20 }
 0xea1   :  { %5258 = vmatprep.subr.bf16.mxu0 %v5257_v25  ;;  %v5281_v25 = vpack.c.bf16 %v3836_v24, %v3835_v22 }
 0xea2   :  { %5228 = vmatpush1.bf16.msra.mxu1 %v5227_v27  ;;  %v3837_v27 = vld [vmem:[#allocation2 + $0x1490] sm:$0xff] }
 0xea3   :  { %5230 = vmatprep.subr.bf16.mxu1 %v5229_v30  ;;  %v3821_v30 = vld [vmem:[#allocation2 + $0x1390] sm:$0xff]  ;;  %v5285_v44 = vpack.c.bf16 %v3838_v29, %v3837_v27 }
 0xea4   :  { %5260 = vmatpush1.bf16.msra.mxu0 %v5259_v35  ;;  %v3840_v35 = vld [vmem:[#allocation2 + $0x14c0] sm:$0xff]  ;;  %v5287_v36 = vpack.c.bf16 %v3822_v31, %v3821_v30 }
 0xea5   :  { %5262 = vmatprep.subr.bf16.mxu0 %v5261_v38  ;;  %v5289_v37 = vpack.c.bf16 %v3840_v35, %v3839_v34  ;;  %v3823_v38 = vld [vmem:[#allocation2 + $0x13b0] sm:$0xff] }
 0xea6   :  { %5232 = vmatpush1.bf16.msra.mxu1 %v5231_v46  ;;  %v3842_v46 = vld [vmem:[#allocation2 + $0x14e0] sm:$0xff]  ;;  %v5291_v47 = vpack.c.bf16 %v3824_v43, %v3823_v38 }
 0xea7   :  { %5234 = vmatprep.subr.bf16.mxu1 %v5233_v49  ;;  %v5293_v48 = vpack.c.bf16 %v3842_v46, %v3841_v45  ;;  %v3825_v49 = vld [vmem:[#allocation2 + $0x13d0] sm:$0xff] }
 0xea8   :  { %5264 = vmatpush1.bf16.msra.mxu0 %v5263_v50  ;;  %v3844_v50 = vld [vmem:[#allocation2 + $0x1500] sm:$0xff]  ;;  %v5295_v51 = vpack.c.bf16 %v3826_v9, %v3825_v49 }
 0xea9   :  { %5266 = vmatprep.subr.bf16.mxu0 %v5265_v53  ;;  %v5297_v52 = vpack.c.bf16 %v3844_v50, %v3843_v17  ;;  %v3827_v53 = vld [vmem:[#allocation2 + $0x13f0] sm:$0xff] }
 0xeaa   :  { %5236 = vmatpush1.bf16.msra.mxu1 %v5235_v55  ;;  %v3846_v55 = vld [vmem:[#allocation2 + $0x1520] sm:$0xff] }
 0xeab   :  { %5238 = vmatprep.subr.bf16.mxu1 %v5237_v57  ;;  %v5299_v57 = vpack.c.bf16 %v3828_v54, %v3827_v53  ;;  %v5301_v58 = vpack.c.bf16 %v3846_v55, %v3845_v39 }
 0xeac   :  { %5268 = vmatpush1.bf16.msra.mxu0 %v5267_v41  ;;  %v3830_v41 = vld [vmem:[#allocation2 + $0x1420] sm:$0xff] }
 0xead   :  { %5270 = vmatprep.subr.bf16.mxu0 %v5269_v62  ;;  %v2925_v62 = vunpack.c.0.s8 %v2924_v40  ;;  %v5303_v0 = vpack.c.bf16 %v3830_v41, %v3829_v33 }
 0xeae   :  { %5240 = vmatpush1.bf16.msra.mxu1 %v5239_v3  ;;  %v3831_v3 = vld [vmem:[#allocation2 + $0x1430] sm:$0xff] }
 0xeaf   :  { %5242 = vmatprep.subr.bf16.mxu1 %v5241_v6  ;;  %v2928_v5 = vsub.s32 %v2925_v62, %v5526_v1  ;;  %v5307_v8 = vpack.c.bf16 %v3832_v4, %v3831_v3 }
 0xeb0   :  { %5272 = vmatpush1.bf16.msra.mxu0 %v5271_v10 }
 0xeb1   :  { %5274 = vmatprep.subr.bf16.mxu0 %v5273_v11 }
 0xeb2   :  { %5244 = vmatpush1.bf16.msra.mxu1 %v5243_v14 }
 0xeb3   :  { %5278 = vmatprep.subr.bf16.mxu1 %v5277_v19 }
 0xeb4   :  { %5276 = vmatpush1.bf16.msra.mxu0 %v5275_v15  ;;  %v2816_v15 = vld [vmem:[#allocation2 + $0x1340] ss:$8 sm:$0x3] }
 0xeb5   :  { %3659 = vmatmul.mubr.f32.vlgmr.msra.gmra.mrb[32].mxu1 %v3592_v16 }
 0xeb6   :  { %5280 = vmatpush3.bf16.msra.mxu1 %v5279_v23 }
 0xeb7   :  { %3783 = vmatmul.mubr.f32.vlgmr.msra.gmra.mrb[36].mxu0 %v3716_v18  ;;  %5282 = vmatprep.subr.bf16.mxu1 %v5281_v25 }
 0xeba   :  { %5284 = vmatpush3.bf16.msra.mxu1 %v5283_v28 }
 0xebb   :  { %5286 = vmatprep.subr.bf16.mxu1 %v5285_v44 }
 0xebe   :  { %5288 = vmatpush3.bf16.msra.mxu1 %v5287_v36 }
 0xebf   :  { %5290 = vmatprep.subr.bf16.mxu1 %v5289_v37 }
 0xec2   :  { %5292 = vmatpush3.bf16.msra.mxu1 %v5291_v47 }
 0xec3   :  { %5294 = vmatprep.subr.bf16.mxu1 %v5293_v48 }
 0xec6   :  { %5296 = vmatpush3.bf16.msra.mxu1 %v5295_v51 }
 0xec7   :  { %5298 = vmatprep.subr.bf16.mxu1 %v5297_v52 }
 0xeca   :  { %5300 = vmatpush3.bf16.msra.mxu1 %v5299_v57 }
 0xecb   :  { %5302 = vmatprep.subr.bf16.mxu1 %v5301_v58 }
 0xece   :  { %5304 = vmatpush3.bf16.msra.mxu1 %v5303_v0 }
 0xecf   :  { %5306 = vmatprep.subr.bf16.mxu1 %v5305_v42  ;;  %v3857_v42 = vsub.s32 1, %v5526_v1 }
 0xed2   :  { %5308 = vmatpush3.bf16.msra.mxu1 %v5307_v8 }
 0xf28   :  { %v2915_v6 = vpop.f32.mrb[26].mxu1 }
 0xf29   :  { %v2917_v7 = vpop.f32.mrb[27].mxu1 }
 0xf2a   :  { %v2922_v10 = vcombine.low %v2915_v6, %v2917_v7  ;;  %v3040_v11 = vpop.f32.mrb[30].mxu0 }
 0xf2b   :  { %v3042_v12 = vpop.f32.mrb[31].mxu0 }
 0xf2c   :  { %v2929_v13 = vrot.slane %v2922_v10, %v2928_v5  ;;  %v3047_v14 = vcombine.low %v3040_v11, %v3042_v12 }
 0xf2e   :  { %v2936_v16 = vrot.slane %v2929_v13, %v2928_v5  ;;  %v3054_v18 = vrot.slane %v3047_v14, %v2928_v5 }
 0xf30   :  { %v2938_v61 = vadd.f32 %v2936_v16, %v2816_v15  ;;  %v3061_v63 = vrot.slane %v3054_v18, %v2928_v5 }
 0xf32   :  { %v3063_v19 = vadd.f32 %v3061_v63, %v2938_v61 }
 0xf48   :  { %v3164_v20 = vpop.f32.mrb[28].mxu1 }
 0xf49   :  { %v3166_v21 = vpop.f32.mrb[29].mxu1 }
 0xf4a   :  { %v3171_v23 = vcombine.low %v3164_v20, %v3166_v21  ;;  %v3288_v22 = vpop.f32.mrb[32].mxu0 }
 0xf4b   :  { %v3290_v24 = vpop.f32.mrb[33].mxu0 }
 0xf4c   :  { %v3178_v25 = vrot.slane %v3171_v23, %v2928_v5  ;;  %v3295_v26 = vcombine.low %v3288_v22, %v3290_v24 }
 0xf4e   :  { %v3185_v32 = vrot.slane %v3178_v25, %v2928_v5  ;;  %v3302_v27 = vrot.slane %v3295_v26, %v2928_v5 }
 0xf50   :  { %v3187_v28 = vadd.f32 %v3185_v32, %v3063_v19  ;;  %v3309_v29 = vrot.slane %v3302_v27, %v2928_v5 }
 0xf52   :  { %v3311_v30 = vadd.f32 %v3309_v29, %v3187_v28 }
 0xf68   :  { %v3412_v31 = vpop.f32.mrb[30].mxu1 }
 0xf69   :  { %v3414_v44 = vpop.f32.mrb[31].mxu1 }
 0xf6a   :  { %v3419_v34 = vcombine.low %v3412_v31, %v3414_v44  ;;  %v3536_v35 = vpop.f32.mrb[34].mxu0 }
 0xf6b   :  { %v3538_v36 = vpop.f32.mrb[35].mxu0 }
 0xf6c   :  { %v3426_v37 = vrot.slane %v3419_v34, %v2928_v5  ;;  %v3543_v38 = vcombine.low %v3536_v35, %v3538_v36 }
 0xf6e   :  { %v3433_v43 = vrot.slane %v3426_v37, %v2928_v5  ;;  %v3550_v45 = vrot.slane %v3543_v38, %v2928_v5 }
 0xf70   :  { %v3435_v46 = vadd.f32 %v3433_v43, %v3311_v30  ;;  %v3557_v47 = vrot.slane %v3550_v45, %v2928_v5 }
 0xf72   :  { %v3559_v48 = vadd.f32 %v3557_v47, %v3435_v46 }
 0xf88   :  { %v3660_v49 = vpop.f32.mrb[32].mxu1 }
 0xf89   :  { %v3662_v9 = vpop.f32.mrb[33].mxu1 }
 0xf8a   :  { %v3667_v17 = vcombine.low %v3660_v49, %v3662_v9  ;;  %v3784_v50 = vpop.f32.mrb[36].mxu0 }
 0xf8b   :  { %v3786_v51 = vpop.f32.mrb[37].mxu0 }
 0xf8c   :  { %v3674_v52 = vrot.slane %v3667_v17, %v2928_v5  ;;  %v3791_v53 = vcombine.low %v3784_v50, %v3786_v51 }
 0xf8e   :  { %v3681_v54 = vrot.slane %v3674_v52, %v2928_v5  ;;  %v3798_v39 = vrot.slane %v3791_v53, %v2928_v5 }
 0xf90   :  { %v3683_v55 = vadd.f32 %v3681_v54, %v3559_v48  ;;  %v3805_v56 = vrot.slane %v3798_v39, %v2928_v5  ;;  %v3849_v5 = vld [vmem:[#allocation2 + $0x1550] ss:$0 sm:$0xff] }
 0xf92   :  { %v3807_v40 = vadd.f32 %v3805_v56, %v3683_v55 }
 0xf94   :  { %v3809_v57 = vmul.f32 0.044715, %v3807_v40  ;;  %v3808_v62 = vmul.f32 0.5, %v3807_v40 }
 0xf96   :  { %v3810_v58 = vmul.f32 %v3809_v57, %v3807_v40 }
 0xf98   :  { %v3811_v33 = vmul.f32 %v3810_v58, %v3807_v40 }
 0xf9a   :  { %v3812_v41 = vadd.f32 %v3811_v33, %v3807_v40 }
 0xf9c   :  { %v3813_v59 = vmul.f32 0.7978845, %v3812_v41 }
 0xf9e   :  { %5343 = vtanh.f32 %v3813_v59 }
 0xfa8   :  { %v5344_v60 = vpop.eup %5343 }
 0xfa9   :  { %v3815_v0 = vadd.f32 1.0, %v5344_v60 }
 0xfab   :  { %v3816_v3 = vmul.f32 %v3815_v0, %v3808_v62 }
 0xfad   :  { %v3858_v4 = vrot.slane %v3816_v3, %v3857_v42  ;;  %v3854_v6 = vrot.slane %v3816_v3, %v5529_v2 }
 0xfaf   :  { %3925 = vmatprep.mubr.f32.mxu1 %v3858_v4 }
 0xfb0   :  { %3926 = vmatmul.mubr.f32.vlgmr.msra.gmra.mrb[34].mxu1 %v3854_v6 }
0x1083   :  { %v4262_v7 = vpop.f32.mrb[34].mxu1 }
0x1084   :  { %v4263_v8 = vpop.f32.mrb[35].mxu1 }
0x1085   :  { %v4264_v10 = vadd.f32 %v4263_v8, %v4262_v7 }
0x1087   :  { %v3928_v11 = vadd.f32 %v4264_v10, %v3849_v5 }
0x1089   :  { %v3934_v12 = vrot.slane %v3928_v11, %v5529_v2 }
0x108b   :  { %3935 = vst [vmem:[#allocation5] sm:$0xff] %v3934_v12 }
0x108c   :  { %5378 = shalt.err (!%p5375_p12)
}
0x108d   :  { %s5379_s6 = scalar_lea.hbm %s5677_s2, 128 }
0x108e   :  { %p5380_p13 = scmp.ne.s32.totalorder %s5677_s2, %s5379_s6  ;;  %p5383_p0 = scmp.lt.u32.totalorder %s5379_s6, %s5677_s2 }
0x1090   :  { %p5385_p1 = pnand %p5383_p0, %p5380_p13 }
0x1092   :  { %5388 = shalt.err (!%p5385_p1)
}
0x1093   :  { %3945 = dma.vmem_to_hbm [thread:$0]  %s3943_s30, 128, %s5677_s2, [#allocation4]  }
0x1094   :  { %5391 = dma.done.wait [#allocation4], 128  }
0x1095   :  { %5392 = vsyncadd [#allocation4], 4294967168 }
0x1096   :  { %3949 = vsyncpa [#allocation3], 1 }
0x1097   :  { %3950 = vsyncpa [#allocation4], 1 }

</bundles_post_ra>
